<compile_context>
chip_gen: v5e
topology: v5e:2x2
jax: 0.10.0
libtpu: 0.0.40
codegen_flags: <defaults>
</compile_context>

<pallas_src>
import math

import jax
import jax.numpy as jnp
from jax.experimental import pallas as pl
from jax.experimental.pallas import tpu as pltpu


# ------------------------------ kernel ---------------------------------------
def _make_encoder_kernel(*, H, S, D, Hd, resident, head_layout):
    hd = D // H

    def to_heads(t, TB):
        # (TB*S, D) compute-dtype -> (H*TB, S, hd), head-major batch (h*TB + b).
        if head_layout == "transpose":
            return (t.reshape(TB * S, H, hd)
                     .transpose(1, 0, 2)
                     .reshape(H * TB, S, hd))
        t3 = t.reshape(TB, S, D)
        return jnp.concatenate(
            [t3[:, :, h * hd:(h + 1) * hd] for h in range(H)], axis=0)

    def from_heads(c, TB):
        # (H*TB, S, hd) compute-dtype -> (TB*S, D).
        if head_layout == "transpose":
            return (c.reshape(H, TB * S, hd)
                     .transpose(1, 0, 2)
                     .reshape(TB * S, D))
        c4 = c.reshape(H, TB, S, hd)
        return jnp.concatenate(
            [c4[h] for h in range(H)], axis=-1).reshape(TB * S, D)

    def kernel(x_ref, mask_ref, wqkv_ref, bqkv_ref, wo_ref, bo_ref,
               w1_ref, b1_ref, w2_ref, b2_ref, gamma_ref, beta_ref, o_ref):
        l = pl.program_id(1)
        wl = l if resident else 0            # layer index into the weight refs
        TB = o_ref.shape[0]
        rows = TB * S
        cdt = wqkv_ref.dtype                 # matmul-operand (compute) dtype

        # Layer 0 consumes the HBM input; later layers reuse the carry that
        # stays resident in the output VMEM block (same block index over l).
        @pl.when(l == 0)
        def _():
            o_ref[...] = x_ref[...]

        x = o_ref[...].reshape(rows, D)      # f32 carry
        x_c = x.astype(cdt)                  # single cast per layer

        def linear(z_c, w, b):
            return jnp.dot(z_c, w, preferred_element_type=jnp.float32) + b

        # Fused q/k/v projection followed by ReLU (as in the reference module).
        qkv = jax.nn.relu(linear(x_c, wqkv_ref[wl], bqkv_ref[wl]))  # (rows, 3D) f32
        qkv_c = qkv.astype(cdt)              # cast BEFORE the head relayout

        qh = to_heads(qkv_c[:, 0:D], TB)
        kh = to_heads(qkv_c[:, D:2 * D], TB)
        vh = to_heads(qkv_c[:, 2 * D:3 * D], TB)

        # Scaled dot-product attention; reference scales by sqrt(input_dim).
        scores = jnp.einsum("bsd,btd->bst", qh, kh,
                            preferred_element_type=jnp.float32)
        scores = scores * (1.0 / math.sqrt(float(D)))
        keep = mask_ref[...].astype(jnp.float32).reshape(H * TB, S, S)
        scores = jnp.where(keep == 0.0, jnp.float32(-1e9), scores)  # masked_fill

        # Softmax in f32; normalizer through the EUP reciprocal.
        m = jnp.max(scores, axis=-1, keepdims=True)
        e = jnp.exp(scores - m)
        # TODO(synk): on v6e/v7x the exp could run in bf16 for EUP throughput.
        p = e * pl.reciprocal(jnp.sum(e, axis=-1, keepdims=True), approx=True)
        # TODO(synk): attention dropout (p=0.1) is an eval-mode identity here.

        ctx = jnp.einsum("bst,btd->bsd", p.astype(cdt), vh,
                         preferred_element_type=jnp.float32)        # (H*TB, S, hd)
        attn = from_heads(ctx.astype(cdt), TB)                      # cast BEFORE merge

        y = linear(attn, wo_ref[wl], bo_ref[wl])                    # output proj, f32

        gamma = gamma_ref[wl]
        beta = beta_ref[wl]

        def layer_norm(z):
            mu = jnp.mean(z, axis=-1, keepdims=True)
            var = jnp.mean((z - mu) ** 2, axis=-1, keepdims=True)
            return (z - mu) * jax.lax.rsqrt(var + 1e-5) * gamma + beta

        y = layer_norm(y)
        # feed-forward: Linear -> ReLU -> Linear, then the SAME LayerNorm again.
        hmid = jax.nn.relu(linear(y.astype(cdt), w1_ref[wl], b1_ref[wl]))
        y = linear(hmid.astype(cdt), w2_ref[wl], b2_ref[wl])
        y = layer_norm(y)
        y = y * math.sqrt(0.5)
        # TODO(synk): end-of-layer Dropout(dropout) is an eval-mode identity here.

        o_ref[...] = y.reshape(o_ref.shape)

    return kernel


# ------------------------------ wrapper ---------------------------------------
def transformer_encoder(x, mask, params_list, num_heads, *,
                        compute_dtype=jnp.bfloat16, block_b=None,
                        weights_resident=None, head_layout=None):
    B, S, D = x.shape
    L = len(params_list)
    H = num_heads
    assert D % H == 0, (D, H)
    Hd = params_list[0]["w1"].shape[-1]
    cdt = compute_dtype
    ic = jnp.dtype(cdt).itemsize
    x = x.astype(jnp.float32)

    if mask is None:
        mask = jnp.ones((B, S, S), jnp.float32)     # all-ones == no masking

    # int8 keep-mask (1 keep / 0 drop) laid out (H, B, S, S): 4x less HBM/VMEM
    # than an f32 additive mask.  Reproduces PyTorch's mask.repeat(H,1,1)
    # quirk exactly: attention batch (b, h) tests mask[(b*H + h) % B] == 0.
    keep = (mask != 0).astype(jnp.int8)
    rep = jnp.tile(keep, (H, 1, 1))                           # rep[i] = keep[i % B]
    mask_hb = rep.reshape(B, H, S, S).transpose(1, 0, 2, 3)   # (H, B, S, S)

    def st(name, dt=None):
        a = jnp.stack([p[name] for p in params_list])
        return a.astype(dt) if dt is not None else a

    # Fused q/k/v projection weights: one MXU launch, one DMA stream.
    wqkv = jnp.concatenate([st("wq", cdt), st("wk", cdt), st("wv", cdt)], axis=-1)
    bqkv = jnp.concatenate([st("bq"), st("bk"), st("bv")], axis=-1)
    wo, w1, w2 = st("wo", cdt), st("w1", cdt), st("w2", cdt)
    bo, b1, b2 = st("bo"), st("b1"), st("b2")
    gamma, beta = st("gamma"), st("beta")

    # ---------------- generation-aware VMEM budget ----------------
    try:
        vmem_cap = int(pltpu.get_tpu_info().vmem_capacity_bytes)
    except Exception:
        vmem_cap = 64 << 20                 # conservative (v7x-sized) fallback
    vmem_limit = max(32 << 20, min(int(0.80 * vmem_cap), vmem_cap - (8 << 20)))

    w_layer = ((3 * D * D + D * D + 2 * D * Hd) * ic
               + (3 * D + D + Hd + D + 2 * D) * 4)

    def est_bytes(tb, res):
        rows = tb * S
        act_blocks = 2 * (2 * rows * D * 4 + H * tb * S * S)   # x/out f32 + i8 mask (2x buf)
        wbytes = 2 * (L * w_layer if res else w_layer)         # 2x buffered
        inter = (rows * 3 * D * (4 + 2 * ic)                   # qkv f32 + cdt + heads
                 + 4 * H * tb * S * S * 4                      # scores / e / p (+slack)
                 + rows * (4 * D + 3 * Hd) * 4)                # ctx / attn / y / ffn
        return act_blocks + wbytes + inter + (4 << 20)         # compiler-scratch headroom

    # ---------------- batch-tile / weight-residency selection ----------------
    row_cap = max(1, 2048 // max(S, 1))     # keep the matmul M dim ~1-2K rows
    cands = ([block_b] if block_b is not None
             else ([d for d in range(1, B + 1) if B % d == 0 and d <= row_cap] or [1]))
    res_opts = ((True, False) if weights_resident is None
                else (bool(weights_resident),))

    def pick():
        # Prefer >= 2 batch tiles (both v7x TensorCores busy), then resident
        # weights (no per-(bi, l) restream), then the largest batch tile.
        for require_two in (True, False):
            for res in res_opts:
                for tb in sorted(cands, reverse=True):
                    if require_two and B >= 2 and B // tb < 2:
                        continue
                    if est_bytes(tb, res) <= vmem_limit:
                        return tb, res
        return min(cands), res_opts[-1]

    TB, resident = pick()

    # ---------------- specs ----------------
    if resident:
        # Full stacked weights, constant block index in BOTH grid axes:
        # fetched once per kernel launch, indexed by program_id(1) in-kernel.
        def wspec(shp):
            return pl.BlockSpec((L,) + shp, lambda bi, l: (0, 0, 0))
    else:
        def wspec(shp):
            return pl.BlockSpec((1,) + shp, lambda bi, l: (l, 0, 0))

    act_spec = pl.BlockSpec((TB, S, D), lambda bi, l: (bi, 0, 0))
    in_specs = [
        act_spec,                                                   # x
        pl.BlockSpec((H, TB, S, S), lambda bi, l: (0, bi, 0, 0)),   # keep mask (int8)
        wspec((D, 3 * D)), wspec((1, 3 * D)),                       # wqkv, bqkv
        wspec((D, D)), wspec((1, D)),                               # wo, bo
        wspec((D, Hd)), wspec((1, Hd)),                             # w1, b1
        wspec((Hd, D)), wspec((1, D)),                              # w2, b2
        wspec((1, D)), wspec((1, D)),                               # gamma, beta
    ]
    # TODO(synk): when D < 128 the (TB, S, D) stores are lane-masked; real
    # configs have D % 128 == 0.  A lane-dense repack of the carry would need
    # an in-kernel (TB, S*D) <-> (TB*S, D) relayout of uncertain net benefit.

    operands = (x, mask_hb, wqkv, bqkv, wo, bo, w1, b1, w2, b2, gamma, beta)

    def build(layout):
        return pl.pallas_call(
            _make_encoder_kernel(H=H, S=S, D=D, Hd=Hd,
                                 resident=resident, head_layout=layout),
            out_shape=jax.ShapeDtypeStruct((B, S, D), jnp.float32),
            grid=(B // TB, L),
            in_specs=in_specs,
            out_specs=act_spec,
            compiler_params=pltpu.CompilerParams(
                dimension_semantics=("parallel", "arbitrary"),
                vmem_limit_bytes=int(vmem_limit)),
        )

    # Try the single-relayout (reshape+transpose) head layout first; fall back
    # to the proven lane-slice + concatenate layout if Mosaic rejects it.
    layouts = (head_layout,) if head_layout else ("transpose", "slice")
    last_err = None
    for layout in layouts:
        try:
            return jax.block_until_ready(build(layout)(*operands))
        except Exception as e:            # lowering/compile fallback
            last_err = e
    raise last_err


# ----------------------- pure-JAX reference (sanity) ------------------------
def _reference(x, mask, params_list, num_heads):
    B, S, D = x.shape
    if mask is None:
        mask = jnp.ones((B, S, S), jnp.float32)
    H = num_heads
    hd = D // H
    for p in params_list:
        q = jax.nn.relu(x @ p["wq"] + p["bq"])
        k = jax.nn.relu(x @ p["wk"] + p["bk"])
        v = jax.nn.relu(x @ p["wv"] + p["bv"])

        def to_batches(t):
            return t.reshape(B, S, H, hd).transpose(0, 2, 1, 3).reshape(B * H, S, hd)

        qb, kb, vb = to_batches(q), to_batches(k), to_batches(v)
        mrep = jnp.tile(mask, (H, 1, 1))                     # mask.repeat(H,1,1)
        scores = qb @ jnp.swapaxes(kb, -2, -1) / math.sqrt(D)
        scores = jnp.where(mrep == 0.0, -1e9, scores)
        w = jax.nn.softmax(scores, axis=-1)
        attn = (w @ vb).reshape(B, H, S, hd).transpose(0, 2, 1, 3).reshape(B, S, D)
        y = attn @ p["wo"] + p["bo"]

        def ln(z):
            mu = z.mean(-1, keepdims=True)
            var = ((z - mu) ** 2).mean(-1, keepdims=True)
            return (z - mu) / jnp.sqrt(var + 1e-5) * p["gamma"] + p["beta"]

        y = ln(y)
        y = jax.nn.relu(y @ p["w1"] + p["b1"]) @ p["w2"] + p["b2"]
        y = ln(y)
        x = y * math.sqrt(0.5)
    return x


# ----------------------------- parameter init -------------------------------
def init_params(key, num_layers, input_dim, hidden_dim):
    params = []
    for i in range(num_layers):
        lkey = jax.random.fold_in(key, i)
        ks = jax.random.split(lkey, 12)

        def lin(kw, kb, fan_in, fan_out):
            bound = 1.0 / math.sqrt(fan_in)
            w = jax.random.uniform(kw, (fan_in, fan_out), jnp.float32, -bound, bound)
            b = jax.random.uniform(kb, (1, fan_out), jnp.float32, -bound, bound)
            return w, b

        wq, bq = lin(ks[0], ks[1], input_dim, input_dim)
        wk, bk = lin(ks[2], ks[3], input_dim, input_dim)
        wv, bv = lin(ks[4], ks[5], input_dim, input_dim)
        wo, bo = lin(ks[6], ks[7], input_dim, input_dim)
        w1, b1 = lin(ks[8], ks[9], input_dim, hidden_dim)
        w2, b2 = lin(ks[10], ks[11], hidden_dim, input_dim)
        params.append(dict(
            wq=wq, bq=bq, wk=wk, bk=bk, wv=wv, bv=bv, wo=wo, bo=bo,
            w1=w1, b1=b1, w2=w2, b2=b2,
            gamma=jnp.ones((1, input_dim), jnp.float32),
            beta=jnp.zeros((1, input_dim), jnp.float32),
        ))
    return params


if __name__ == "__main__":
    B, S = 2, 8
    input_dim, hidden_dim = 32, 64
    num_layers, num_heads = 2, 4

    key = jax.random.PRNGKey(0)
    kx, kp = jax.random.split(key)
    x = jax.random.normal(kx, (B, S, input_dim), jnp.float32)
    # causal mask (1 = keep, 0 = mask out), shape (B, S, S)
    mask = jnp.broadcast_to(jnp.tril(jnp.ones((S, S), jnp.float32)), (B, S, S))

    params = init_params(kp, num_layers, input_dim, hidden_dim)
    ref = _reference(x, mask, params, num_heads)

    # f32 matmul-operand path: near-exact vs reference (approx softmax recip).
    out_f32 = jax.block_until_ready(
        transformer_encoder(x, mask, params, num_heads,
                            compute_dtype=jnp.float32))
    assert out_f32.shape == (B, S, input_dim)
    err32 = float(jnp.max(jnp.abs(out_f32 - ref)))
    assert err32 < 2e-2, f"f32 path max err {err32}"

    # Default path: bf16 matmul operands, f32 accumulation / softmax / LN.
    out_bf16 = jax.block_until_ready(
        transformer_encoder(x, mask, params, num_heads))
    err16 = float(jnp.max(jnp.abs(out_bf16 - ref)))
    assert err16 < 2e-1, f"bf16 path max err {err16}"

    # Also exercise the streamed-weights path (used when the stacked weights
    # exceed the VMEM budget on larger models).
    out_stream = jax.block_until_ready(
        transformer_encoder(x, mask, params, num_heads, weights_resident=False))
    errs = float(jnp.max(jnp.abs(out_stream - ref)))
    assert errs < 2e-1, f"streamed path max err {errs}"

    print("KERNEL_OK")
</pallas_src>

<mosaic_0001>
module attributes {stable_mosaic.version = 11 : i64} {
  func.func @kernel(%arg0: i32, %arg1: i32, %arg2: memref<1x8x32xf32, #tpu.memory_space<vmem>>, %arg3: memref<4x1x8x8xi8, #tpu.memory_space<vmem>>, %arg4: memref<2x32x96xf32, #tpu.memory_space<vmem>>, %arg5: memref<2x1x96xf32, #tpu.memory_space<vmem>>, %arg6: memref<2x32x32xf32, #tpu.memory_space<vmem>>, %arg7: memref<2x1x32xf32, #tpu.memory_space<vmem>>, %arg8: memref<2x32x64xf32, #tpu.memory_space<vmem>>, %arg9: memref<2x1x64xf32, #tpu.memory_space<vmem>>, %arg10: memref<2x64x32xf32, #tpu.memory_space<vmem>>, %arg11: memref<2x1x32xf32, #tpu.memory_space<vmem>>, %arg12: memref<2x1x32xf32, #tpu.memory_space<vmem>>, %arg13: memref<2x1x32xf32, #tpu.memory_space<vmem>>, %arg14: memref<1x8x32xf32, #tpu.memory_space<vmem>>) attributes {dimension_semantics = [#tpu.dimension_semantics<parallel>, #tpu.dimension_semantics<arbitrary>], iteration_bounds = array<i64: 2, 2>, scalar_prefetch = 0 : i64, scratch_operands = 0 : i64, tpu.core_type = #tpu.core_type<tc>, window_params = [{transform_indices = @transform_0, window_bounds = array<i64: 1, 8, 32>}, {transform_indices = @transform_1, window_bounds = array<i64: 4, 1, 8, 8>}, {pipeline_mode = #tpu.pipeline_mode<synchronous>, transform_indices = @transform_2, window_bounds = array<i64: 2, 32, 96>}, {pipeline_mode = #tpu.pipeline_mode<synchronous>, transform_indices = @transform_3, window_bounds = array<i64: 2, 1, 96>}, {pipeline_mode = #tpu.pipeline_mode<synchronous>, transform_indices = @transform_4, window_bounds = array<i64: 2, 32, 32>}, {pipeline_mode = #tpu.pipeline_mode<synchronous>, transform_indices = @transform_5, window_bounds = array<i64: 2, 1, 32>}, {pipeline_mode = #tpu.pipeline_mode<synchronous>, transform_indices = @transform_6, window_bounds = array<i64: 2, 32, 64>}, {pipeline_mode = #tpu.pipeline_mode<synchronous>, transform_indices = @transform_7, window_bounds = array<i64: 2, 1, 64>}, {pipeline_mode = #tpu.pipeline_mode<synchronous>, transform_indices = @transform_8, window_bounds = array<i64: 2, 64, 32>}, {pipeline_mode = #tpu.pipeline_mode<synchronous>, transform_indices = @transform_9, window_bounds = array<i64: 2, 1, 32>}, {pipeline_mode = #tpu.pipeline_mode<synchronous>, transform_indices = @transform_10, window_bounds = array<i64: 2, 1, 32>}, {pipeline_mode = #tpu.pipeline_mode<synchronous>, transform_indices = @transform_11, window_bounds = array<i64: 2, 1, 32>}, {transform_indices = @transform_12, window_bounds = array<i64: 1, 8, 32>}]} {
    %c0_i32 = arith.constant 0 : i32
    %0 = arith.cmpi eq, %arg1, %c0_i32 : i32
    %1 = arith.extui %0 : i1 to i32
    %c0_i32_0 = arith.constant 0 : i32
    %2 = arith.cmpi ne, %1, %c0_i32_0 : i32
    scf.if %2 {
      %c0_53 = arith.constant 0 : index
      %c0_54 = arith.constant 0 : index
      %c0_55 = arith.constant 0 : index
      %131 = vector.load %arg2[%c0_53, %c0_54, %c0_55] : memref<1x8x32xf32, #tpu.memory_space<vmem>>, vector<1x8x32xf32>
      %c0_56 = arith.constant 0 : index
      %c0_57 = arith.constant 0 : index
      %c0_58 = arith.constant 0 : index
      %132 = vector.load %arg14[%c0_56, %c0_57, %c0_58] : memref<1x8x32xf32, #tpu.memory_space<vmem>>, vector<1x8x32xf32>
      tpu.vector_store %arg14[%c0_56, %c0_57, %c0_58], %131 {strides = array<i32>} : memref<1x8x32xf32, #tpu.memory_space<vmem>>, vector<1x8x32xf32>,
    } else {
    }
    %c0 = arith.constant 0 : index
    %c0_1 = arith.constant 0 : index
    %c0_2 = arith.constant 0 : index
    %3 = vector.load %arg14[%c0, %c0_1, %c0_2] : memref<1x8x32xf32, #tpu.memory_space<vmem>>, vector<1x8x32xf32>
    %4 = vector.shape_cast %3 : vector<1x8x32xf32> to vector<8x32xf32>
    %5 = arith.index_cast %arg1 : i32 to index
    %c0_3 = arith.constant 0 : index
    %c0_4 = arith.constant 0 : index
    %6 = vector.load %arg4[%5, %c0_3, %c0_4] : memref<2x32x96xf32, #tpu.memory_space<vmem>>, vector<1x32x96xf32>
    %7 = vector.shape_cast %6 : vector<1x32x96xf32> to vector<32x96xf32>
    %8 = arith.index_cast %arg1 : i32 to index
    %c0_5 = arith.constant 0 : index
    %c0_6 = arith.constant 0 : index
    %9 = vector.load %arg5[%8, %c0_5, %c0_6] : memref<2x1x96xf32, #tpu.memory_space<vmem>>, vector<1x1x96xf32>
    %10 = vector.shape_cast %9 : vector<1x1x96xf32> to vector<1x96xf32>
    %cst = arith.constant dense<0.000000e+00> : vector<8x96xf32>
    %11 = tpu.matmul %4, %7, %cst {dimension_numbers = #tpu.dot_dimension_numbers<[1], [0], [0], [1], [0, 0, 1, 1], [], []>} : vector<8x32xf32>, vector<32x96xf32>, vector<8x96xf32> -> vector<8x96xf32>
    %12 = vector.broadcast %10 : vector<1x96xf32> to vector<8x96xf32>
    %13 = arith.addf %11, %12 : vector<8x96xf32>
    %cst_7 = arith.constant 0.000000e+00 : f32
    %14 = vector.broadcast %cst_7 : f32 to vector<8x96xf32>
    %15 = arith.maximumf %13, %14 : vector<8x96xf32>
    %16 = vector.extract_strided_slice %15 {offsets = [0, 0], sizes = [8, 32], strides = [1, 1]} : vector<8x96xf32> to vector<8x32xf32>
    %17 = vector.shape_cast %16 : vector<8x32xf32> to vector<8x4x8xf32>
    %18 = tpu.transpose %17, [1, 0, 2] : vector<8x4x8xf32> -> vector<4x8x8xf32>
    %19 = vector.extract_strided_slice %15 {offsets = [0, 32], sizes = [8, 32], strides = [1, 1]} : vector<8x96xf32> to vector<8x32xf32>
    %20 = vector.shape_cast %19 : vector<8x32xf32> to vector<8x4x8xf32>
    %21 = tpu.transpose %20, [1, 0, 2] : vector<8x4x8xf32> -> vector<4x8x8xf32>
    %22 = vector.extract_strided_slice %15 {offsets = [0, 64], sizes = [8, 32], strides = [1, 1]} : vector<8x96xf32> to vector<8x32xf32>
    %23 = vector.shape_cast %22 : vector<8x32xf32> to vector<8x4x8xf32>
    %24 = tpu.transpose %23, [1, 0, 2] : vector<8x4x8xf32> -> vector<4x8x8xf32>
    "tpu.trace_start"() <{level = 10 : i32, message = "bsd,btd->bst"}> : () -> ()
    %cst_8 = arith.constant dense<0.000000e+00> : vector<4x8x8xf32>
    %25 = tpu.matmul %18, %21, %cst_8 {dimension_numbers = #tpu.dot_dimension_numbers<[2], [2], [1], [1], [0, 0, 0, 1, 1, 1], [0], [0]>} : vector<4x8x8xf32>, vector<4x8x8xf32>, vector<4x8x8xf32> -> vector<4x8x8xf32>
    "tpu.trace_stop"() : () -> ()
    %cst_9 = arith.constant 0.176776692 : f32
    %26 = vector.broadcast %cst_9 : f32 to vector<4x8x8xf32>
    %27 = arith.mulf %25, %26 : vector<4x8x8xf32>
    %c0_10 = arith.constant 0 : index
    %c0_11 = arith.constant 0 : index
    %c0_12 = arith.constant 0 : index
    %c0_13 = arith.constant 0 : index
    %28 = vector.load %arg3[%c0_10, %c0_11, %c0_12, %c0_13] : memref<4x1x8x8xi8, #tpu.memory_space<vmem>>, vector<4x1x8x8xi8>
    %29 = arith.sitofp %28 : vector<4x1x8x8xi8> to vector<4x1x8x8xf32>
    %30 = vector.shape_cast %29 : vector<4x1x8x8xf32> to vector<4x8x8xf32>
    %cst_14 = arith.constant 0.000000e+00 : f32
    %31 = vector.broadcast %cst_14 : f32 to vector<4x8x8xf32>
    %32 = arith.cmpf oeq, %30, %31 : vector<4x8x8xf32>
    %cst_15 = arith.constant -1.000000e+09 : f32
    %33 = vector.broadcast %cst_15 : f32 to vector<4x8x8xf32>
    %34 = arith.select %32, %33, %27 : vector<4x8x8xi1>, vector<4x8x8xf32>
    %cst_16 = arith.constant dense<0xFF800000> : vector<4x8xf32>
    %35 = vector.multi_reduction <maximumf>, %34, %cst_16 [2] : vector<4x8x8xf32> to vector<4x8xf32>
    %36 = vector.shape_cast %35 : vector<4x8xf32> to vector<4x8x1xf32>
    %37 = vector.broadcast %36 : vector<4x8x1xf32> to vector<4x8x8xf32>
    %38 = arith.subf %34, %37 : vector<4x8x8xf32>
    %39 = math.exp %38 : vector<4x8x8xf32>
    %cst_17 = arith.constant dense<0.000000e+00> : vector<4x8xf32>
    %40 = vector.multi_reduction <add>, %39, %cst_17 [2] : vector<4x8x8xf32> to vector<4x8xf32>
    %41 = vector.shape_cast %40 : vector<4x8xf32> to vector<4x8x1xf32>
    %42 = tpu.reciprocal %41 {approx = true} : vector<4x8x1xf32> -> vector<4x8x1xf32>
    %43 = vector.broadcast %42 : vector<4x8x1xf32> to vector<4x8x8xf32>
    %44 = arith.mulf %39, %43 : vector<4x8x8xf32>
    "tpu.trace_start"() <{level = 10 : i32, message = "bst,btd->bsd"}> : () -> ()
    %cst_18 = arith.constant dense<0.000000e+00> : vector<4x8x8xf32>
    %45 = tpu.matmul %44, %24, %cst_18 {dimension_numbers = #tpu.dot_dimension_numbers<[2], [1], [1], [2], [0, 0, 0, 1, 1, 2], [0], [0]>} : vector<4x8x8xf32>, vector<4x8x8xf32>, vector<4x8x8xf32> -> vector<4x8x8xf32>
    "tpu.trace_stop"() : () -> ()
    %46 = tpu.transpose %45, [1, 0, 2] : vector<4x8x8xf32> -> vector<8x4x8xf32>
    %47 = vector.shape_cast %46 : vector<8x4x8xf32> to vector<8x32xf32>
    %48 = arith.index_cast %arg1 : i32 to index
    %c0_19 = arith.constant 0 : index
    %c0_20 = arith.constant 0 : index
    %49 = vector.load %arg6[%48, %c0_19, %c0_20] : memref<2x32x32xf32, #tpu.memory_space<vmem>>, vector<1x32x32xf32>
    %50 = vector.shape_cast %49 : vector<1x32x32xf32> to vector<32x32xf32>
    %51 = arith.index_cast %arg1 : i32 to index
    %c0_21 = arith.constant 0 : index
    %c0_22 = arith.constant 0 : index
    %52 = vector.load %arg7[%51, %c0_21, %c0_22] : memref<2x1x32xf32, #tpu.memory_space<vmem>>, vector<1x1x32xf32>
    %53 = vector.shape_cast %52 : vector<1x1x32xf32> to vector<1x32xf32>
    %cst_23 = arith.constant dense<0.000000e+00> : vector<8x32xf32>
    %54 = tpu.matmul %47, %50, %cst_23 {dimension_numbers = #tpu.dot_dimension_numbers<[1], [0], [0], [1], [0, 0, 1, 1], [], []>} : vector<8x32xf32>, vector<32x32xf32>, vector<8x32xf32> -> vector<8x32xf32>
    %55 = vector.broadcast %53 : vector<1x32xf32> to vector<8x32xf32>
    %56 = arith.addf %54, %55 : vector<8x32xf32>
    %57 = arith.index_cast %arg1 : i32 to index
    %c0_24 = arith.constant 0 : index
    %c0_25 = arith.constant 0 : index
    %58 = vector.load %arg12[%57, %c0_24, %c0_25] : memref<2x1x32xf32, #tpu.memory_space<vmem>>, vector<1x1x32xf32>
    %59 = vector.shape_cast %58 : vector<1x1x32xf32> to vector<1x32xf32>
    %60 = arith.index_cast %arg1 : i32 to index
    %c0_26 = arith.constant 0 : index
    %c0_27 = arith.constant 0 : index
    %61 = vector.load %arg13[%60, %c0_26, %c0_27] : memref<2x1x32xf32, #tpu.memory_space<vmem>>, vector<1x1x32xf32>
    %62 = vector.shape_cast %61 : vector<1x1x32xf32> to vector<1x32xf32>
    %cst_28 = arith.constant dense<0.000000e+00> : vector<8xf32>
    %63 = vector.multi_reduction <add>, %56, %cst_28 [1] : vector<8x32xf32> to vector<8xf32>
    %64 = vector.shape_cast %63 : vector<8xf32> to vector<8x1xf32>
    %cst_29 = arith.constant 3.200000e+01 : f32
    %65 = vector.broadcast %cst_29 : f32 to vector<8x1xf32>
    %66 = arith.divf %64, %65 : vector<8x1xf32>
    %67 = vector.broadcast %66 : vector<8x1xf32> to vector<8x32xf32>
    %68 = arith.subf %56, %67 : vector<8x32xf32>
    %69 = arith.mulf %68, %68 : vector<8x32xf32>
    %cst_30 = arith.constant dense<0.000000e+00> : vector<8xf32>
    %70 = vector.multi_reduction <add>, %69, %cst_30 [1] : vector<8x32xf32> to vector<8xf32>
    %71 = vector.shape_cast %70 : vector<8xf32> to vector<8x1xf32>
    %cst_31 = arith.constant 3.200000e+01 : f32
    %72 = vector.broadcast %cst_31 : f32 to vector<8x1xf32>
    %73 = arith.divf %71, %72 : vector<8x1xf32>
    %74 = vector.broadcast %66 : vector<8x1xf32> to vector<8x32xf32>
    %75 = arith.subf %56, %74 : vector<8x32xf32>
    %cst_32 = arith.constant 9.99999974E-6 : f32
    %76 = vector.broadcast %cst_32 : f32 to vector<8x1xf32>
    %77 = arith.addf %73, %76 : vector<8x1xf32>
    %78 = math.rsqrt %77 : vector<8x1xf32>
    %79 = vector.broadcast %78 : vector<8x1xf32> to vector<8x32xf32>
    %80 = arith.mulf %75, %79 : vector<8x32xf32>
    %81 = vector.broadcast %59 : vector<1x32xf32> to vector<8x32xf32>
    %82 = arith.mulf %80, %81 : vector<8x32xf32>
    %83 = vector.broadcast %62 : vector<1x32xf32> to vector<8x32xf32>
    %84 = arith.addf %82, %83 : vector<8x32xf32>
    %85 = arith.index_cast %arg1 : i32 to index
    %c0_33 = arith.constant 0 : index
    %c0_34 = arith.constant 0 : index
    %86 = vector.load %arg8[%85, %c0_33, %c0_34] : memref<2x32x64xf32, #tpu.memory_space<vmem>>, vector<1x32x64xf32>
    %87 = vector.shape_cast %86 : vector<1x32x64xf32> to vector<32x64xf32>
    %88 = arith.index_cast %arg1 : i32 to index
    %c0_35 = arith.constant 0 : index
    %c0_36 = arith.constant 0 : index
    %89 = vector.load %arg9[%88, %c0_35, %c0_36] : memref<2x1x64xf32, #tpu.memory_space<vmem>>, vector<1x1x64xf32>
    %90 = vector.shape_cast %89 : vector<1x1x64xf32> to vector<1x64xf32>
    %cst_37 = arith.constant dense<0.000000e+00> : vector<8x64xf32>
    %91 = tpu.matmul %84, %87, %cst_37 {dimension_numbers = #tpu.dot_dimension_numbers<[1], [0], [0], [1], [0, 0, 1, 1], [], []>} : vector<8x32xf32>, vector<32x64xf32>, vector<8x64xf32> -> vector<8x64xf32>
    %92 = vector.broadcast %90 : vector<1x64xf32> to vector<8x64xf32>
    %93 = arith.addf %91, %92 : vector<8x64xf32>
    %cst_38 = arith.constant 0.000000e+00 : f32
    %94 = vector.broadcast %cst_38 : f32 to vector<8x64xf32>
    %95 = arith.maximumf %93, %94 : vector<8x64xf32>
    %96 = arith.index_cast %arg1 : i32 to index
    %c0_39 = arith.constant 0 : index
    %c0_40 = arith.constant 0 : index
    %97 = vector.load %arg10[%96, %c0_39, %c0_40] : memref<2x64x32xf32, #tpu.memory_space<vmem>>, vector<1x64x32xf32>
    %98 = vector.shape_cast %97 : vector<1x64x32xf32> to vector<64x32xf32>
    %99 = arith.index_cast %arg1 : i32 to index
    %c0_41 = arith.constant 0 : index
    %c0_42 = arith.constant 0 : index
    %100 = vector.load %arg11[%99, %c0_41, %c0_42] : memref<2x1x32xf32, #tpu.memory_space<vmem>>, vector<1x1x32xf32>
    %101 = vector.shape_cast %100 : vector<1x1x32xf32> to vector<1x32xf32>
    %cst_43 = arith.constant dense<0.000000e+00> : vector<8x32xf32>
    %102 = tpu.matmul %95, %98, %cst_43 {dimension_numbers = #tpu.dot_dimension_numbers<[1], [0], [0], [1], [0, 0, 1, 1], [], []>} : vector<8x64xf32>, vector<64x32xf32>, vector<8x32xf32> -> vector<8x32xf32>
    %103 = vector.broadcast %101 : vector<1x32xf32> to vector<8x32xf32>
    %104 = arith.addf %102, %103 : vector<8x32xf32>
    %cst_44 = arith.constant dense<0.000000e+00> : vector<8xf32>
    %105 = vector.multi_reduction <add>, %104, %cst_44 [1] : vector<8x32xf32> to vector<8xf32>
    %106 = vector.shape_cast %105 : vector<8xf32> to vector<8x1xf32>
    %cst_45 = arith.constant 3.200000e+01 : f32
    %107 = vector.broadcast %cst_45 : f32 to vector<8x1xf32>
    %108 = arith.divf %106, %107 : vector<8x1xf32>
    %109 = vector.broadcast %108 : vector<8x1xf32> to vector<8x32xf32>
    %110 = arith.subf %104, %109 : vector<8x32xf32>
    %111 = arith.mulf %110, %110 : vector<8x32xf32>
    %cst_46 = arith.constant dense<0.000000e+00> : vector<8xf32>
    %112 = vector.multi_reduction <add>, %111, %cst_46 [1] : vector<8x32xf32> to vector<8xf32>
    %113 = vector.shape_cast %112 : vector<8xf32> to vector<8x1xf32>
    %cst_47 = arith.constant 3.200000e+01 : f32
    %114 = vector.broadcast %cst_47 : f32 to vector<8x1xf32>
    %115 = arith.divf %113, %114 : vector<8x1xf32>
    %116 = vector.broadcast %108 : vector<8x1xf32> to vector<8x32xf32>
    %117 = arith.subf %104, %116 : vector<8x32xf32>
    %cst_48 = arith.constant 9.99999974E-6 : f32
    %118 = vector.broadcast %cst_48 : f32 to vector<8x1xf32>
    %119 = arith.addf %115, %118 : vector<8x1xf32>
    %120 = math.rsqrt %119 : vector<8x1xf32>
    %121 = vector.broadcast %120 : vector<8x1xf32> to vector<8x32xf32>
    %122 = arith.mulf %117, %121 : vector<8x32xf32>
    %123 = vector.broadcast %59 : vector<1x32xf32> to vector<8x32xf32>
    %124 = arith.mulf %122, %123 : vector<8x32xf32>
    %125 = vector.broadcast %62 : vector<1x32xf32> to vector<8x32xf32>
    %126 = arith.addf %124, %125 : vector<8x32xf32>
    %cst_49 = arith.constant 0.707106769 : f32
    %127 = vector.broadcast %cst_49 : f32 to vector<8x32xf32>
    %128 = arith.mulf %126, %127 : vector<8x32xf32>
    %129 = vector.shape_cast %128 : vector<8x32xf32> to vector<1x8x32xf32>
    %c0_50 = arith.constant 0 : index
    %c0_51 = arith.constant 0 : index
    %c0_52 = arith.constant 0 : index
    %130 = vector.load %arg14[%c0_50, %c0_51, %c0_52] : memref<1x8x32xf32, #tpu.memory_space<vmem>>, vector<1x8x32xf32>
    tpu.vector_store %arg14[%c0_50, %c0_51, %c0_52], %129 {strides = array<i32>} : memref<1x8x32xf32, #tpu.memory_space<vmem>>, vector<1x8x32xf32>,
    return
  }
  func.func @transform_0(%arg0: i32, %arg1: i32) -> (i32, i32, i32) {
    %c0_i32 = arith.constant 0 : i32
    %c0_i32_0 = arith.constant 0 : i32
    %c0_i32_1 = arith.constant 0 : i32
    return %arg0, %c0_i32, %c0_i32_0 : i32, i32, i32
  }
  func.func @transform_1(%arg0: i32, %arg1: i32) -> (i32, i32, i32, i32) {
    %c0_i32 = arith.constant 0 : i32
    %c0_i32_0 = arith.constant 0 : i32
    %c0_i32_1 = arith.constant 0 : i32
    %c0_i32_2 = arith.constant 0 : i32
    return %c0_i32, %arg0, %c0_i32_0, %c0_i32_1 : i32, i32, i32, i32
  }
  func.func @transform_2(%arg0: i32, %arg1: i32) -> (i32, i32, i32) {
    %c0_i32 = arith.constant 0 : i32
    %c0_i32_0 = arith.constant 0 : i32
    %c0_i32_1 = arith.constant 0 : i32
    %c0_i32_2 = arith.constant 0 : i32
    return %c0_i32, %c0_i32_0, %c0_i32_1 : i32, i32, i32
  }
  func.func @transform_3(%arg0: i32, %arg1: i32) -> (i32, i32, i32) {
    %c0_i32 = arith.constant 0 : i32
    %c0_i32_0 = arith.constant 0 : i32
    %c0_i32_1 = arith.constant 0 : i32
    %c0_i32_2 = arith.constant 0 : i32
    return %c0_i32, %c0_i32_0, %c0_i32_1 : i32, i32, i32
  }
  func.func @transform_4(%arg0: i32, %arg1: i32) -> (i32, i32, i32) {
    %c0_i32 = arith.constant 0 : i32
    %c0_i32_0 = arith.constant 0 : i32
    %c0_i32_1 = arith.constant 0 : i32
    %c0_i32_2 = arith.constant 0 : i32
    return %c0_i32, %c0_i32_0, %c0_i32_1 : i32, i32, i32
  }
  func.func @transform_5(%arg0: i32, %arg1: i32) -> (i32, i32, i32) {
    %c0_i32 = arith.constant 0 : i32
    %c0_i32_0 = arith.constant 0 : i32
    %c0_i32_1 = arith.constant 0 : i32
    %c0_i32_2 = arith.constant 0 : i32
    return %c0_i32, %c0_i32_0, %c0_i32_1 : i32, i32, i32
  }
  func.func @transform_6(%arg0: i32, %arg1: i32) -> (i32, i32, i32) {
    %c0_i32 = arith.constant 0 : i32
    %c0_i32_0 = arith.constant 0 : i32
    %c0_i32_1 = arith.constant 0 : i32
    %c0_i32_2 = arith.constant 0 : i32
    return %c0_i32, %c0_i32_0, %c0_i32_1 : i32, i32, i32
  }
  func.func @transform_7(%arg0: i32, %arg1: i32) -> (i32, i32, i32) {
    %c0_i32 = arith.constant 0 : i32
    %c0_i32_0 = arith.constant 0 : i32
    %c0_i32_1 = arith.constant 0 : i32
    %c0_i32_2 = arith.constant 0 : i32
    return %c0_i32, %c0_i32_0, %c0_i32_1 : i32, i32, i32
  }
  func.func @transform_8(%arg0: i32, %arg1: i32) -> (i32, i32, i32) {
    %c0_i32 = arith.constant 0 : i32
    %c0_i32_0 = arith.constant 0 : i32
    %c0_i32_1 = arith.constant 0 : i32
    %c0_i32_2 = arith.constant 0 : i32
    return %c0_i32, %c0_i32_0, %c0_i32_1 : i32, i32, i32
  }
  func.func @transform_9(%arg0: i32, %arg1: i32) -> (i32, i32, i32) {
    %c0_i32 = arith.constant 0 : i32
    %c0_i32_0 = arith.constant 0 : i32
    %c0_i32_1 = arith.constant 0 : i32
    %c0_i32_2 = arith.constant 0 : i32
    return %c0_i32, %c0_i32_0, %c0_i32_1 : i32, i32, i32
  }
  func.func @transform_10(%arg0: i32, %arg1: i32) -> (i32, i32, i32) {
    %c0_i32 = arith.constant 0 : i32
    %c0_i32_0 = arith.constant 0 : i32
    %c0_i32_1 = arith.constant 0 : i32
    %c0_i32_2 = arith.constant 0 : i32
    return %c0_i32, %c0_i32_0, %c0_i32_1 : i32, i32, i32
  }
  func.func @transform_11(%arg0: i32, %arg1: i32) -> (i32, i32, i32) {
    %c0_i32 = arith.constant 0 : i32
    %c0_i32_0 = arith.constant 0 : i32
    %c0_i32_1 = arith.constant 0 : i32
    %c0_i32_2 = arith.constant 0 : i32
    return %c0_i32, %c0_i32_0, %c0_i32_1 : i32, i32, i32
  }
  func.func @transform_12(%arg0: i32, %arg1: i32) -> (i32, i32, i32) {
    %c0_i32 = arith.constant 0 : i32
    %c0_i32_0 = arith.constant 0 : i32
    %c0_i32_1 = arith.constant 0 : i32
    return %arg0, %c0_i32, %c0_i32_0 : i32, i32, i32
  }
}

module attributes {stable_mosaic.version = 11 : i64} {
  func.func @kernel(%arg0: i32, %arg1: i32, %arg2: memref<1x8x32xf32, #tpu.memory_space<vmem>>, %arg3: memref<4x1x8x8xi8, #tpu.memory_space<vmem>>, %arg4: memref<2x32x96xf32, #tpu.memory_space<vmem>>, %arg5: memref<2x1x96xf32, #tpu.memory_space<vmem>>, %arg6: memref<2x32x32xf32, #tpu.memory_space<vmem>>, %arg7: memref<2x1x32xf32, #tpu.memory_space<vmem>>, %arg8: memref<2x32x64xf32, #tpu.memory_space<vmem>>, %arg9: memref<2x1x64xf32, #tpu.memory_space<vmem>>, %arg10: memref<2x64x32xf32, #tpu.memory_space<vmem>>, %arg11: memref<2x1x32xf32, #tpu.memory_space<vmem>>, %arg12: memref<2x1x32xf32, #tpu.memory_space<vmem>>, %arg13: memref<2x1x32xf32, #tpu.memory_space<vmem>>, %arg14: memref<1x8x32xf32, #tpu.memory_space<vmem>>) attributes {dimension_semantics = [#tpu.dimension_semantics<parallel>, #tpu.dimension_semantics<arbitrary>], iteration_bounds = array<i64: 2, 2>, scalar_prefetch = 0 : i64, scratch_operands = 0 : i64, tpu.core_type = #tpu.core_type<tc>, window_params = [{transform_indices = @transform_0, window_bounds = array<i64: 1, 8, 32>}, {transform_indices = @transform_1, window_bounds = array<i64: 4, 1, 8, 8>}, {pipeline_mode = #tpu.pipeline_mode<synchronous>, transform_indices = @transform_2, window_bounds = array<i64: 2, 32, 96>}, {pipeline_mode = #tpu.pipeline_mode<synchronous>, transform_indices = @transform_3, window_bounds = array<i64: 2, 1, 96>}, {pipeline_mode = #tpu.pipeline_mode<synchronous>, transform_indices = @transform_4, window_bounds = array<i64: 2, 32, 32>}, {pipeline_mode = #tpu.pipeline_mode<synchronous>, transform_indices = @transform_5, window_bounds = array<i64: 2, 1, 32>}, {pipeline_mode = #tpu.pipeline_mode<synchronous>, transform_indices = @transform_6, window_bounds = array<i64: 2, 32, 64>}, {pipeline_mode = #tpu.pipeline_mode<synchronous>, transform_indices = @transform_7, window_bounds = array<i64: 2, 1, 64>}, {pipeline_mode = #tpu.pipeline_mode<synchronous>, transform_indices = @transform_8, window_bounds = array<i64: 2, 64, 32>}, {pipeline_mode = #tpu.pipeline_mode<synchronous>, transform_indices = @transform_9, window_bounds = array<i64: 2, 1, 32>}, {pipeline_mode = #tpu.pipeline_mode<synchronous>, transform_indices = @transform_10, window_bounds = array<i64: 2, 1, 32>}, {pipeline_mode = #tpu.pipeline_mode<synchronous>, transform_indices = @transform_11, window_bounds = array<i64: 2, 1, 32>}, {transform_indices = @transform_12, window_bounds = array<i64: 1, 8, 32>}]} {
    %c0_i32 = arith.constant 0 : i32
    %0 = arith.cmpi eq, %arg1, %c0_i32 : i32
    %1 = arith.extui %0 : i1 to i32
    %c0_i32_0 = arith.constant 0 : i32
    %2 = arith.cmpi ne, %1, %c0_i32_0 : i32
    scf.if %2 {
      %c0_53 = arith.constant 0 : index
      %c0_54 = arith.constant 0 : index
      %c0_55 = arith.constant 0 : index
      %152 = vector.load %arg2[%c0_53, %c0_54, %c0_55] : memref<1x8x32xf32, #tpu.memory_space<vmem>>, vector<1x8x32xf32>
      %c0_56 = arith.constant 0 : index
      %c0_57 = arith.constant 0 : index
      %c0_58 = arith.constant 0 : index
      %153 = vector.load %arg14[%c0_56, %c0_57, %c0_58] : memref<1x8x32xf32, #tpu.memory_space<vmem>>, vector<1x8x32xf32>
      tpu.vector_store %arg14[%c0_56, %c0_57, %c0_58], %152 {strides = array<i32>} : memref<1x8x32xf32, #tpu.memory_space<vmem>>, vector<1x8x32xf32>,
    } else {
    }
    %c0 = arith.constant 0 : index
    %c0_1 = arith.constant 0 : index
    %c0_2 = arith.constant 0 : index
    %3 = vector.load %arg14[%c0, %c0_1, %c0_2] : memref<1x8x32xf32, #tpu.memory_space<vmem>>, vector<1x8x32xf32>
    %4 = vector.shape_cast %3 : vector<1x8x32xf32> to vector<8x32xf32>
    %5 = arith.index_cast %arg1 : i32 to index
    %c0_3 = arith.constant 0 : index
    %c0_4 = arith.constant 0 : index
    %6 = vector.load %arg4[%5, %c0_3, %c0_4] : memref<2x32x96xf32, #tpu.memory_space<vmem>>, vector<1x32x96xf32>
    %7 = vector.shape_cast %6 : vector<1x32x96xf32> to vector<32x96xf32>
    %8 = arith.index_cast %arg1 : i32 to index
    %c0_5 = arith.constant 0 : index
    %c0_6 = arith.constant 0 : index
    %9 = vector.load %arg5[%8, %c0_5, %c0_6] : memref<2x1x96xf32, #tpu.memory_space<vmem>>, vector<1x1x96xf32>
    %10 = vector.shape_cast %9 : vector<1x1x96xf32> to vector<1x96xf32>
    %cst = arith.constant dense<0.000000e+00> : vector<8x96xf32>
    %11 = tpu.matmul %4, %7, %cst {dimension_numbers = #tpu.dot_dimension_numbers<[1], [0], [0], [1], [0, 0, 1, 1], [], []>} : vector<8x32xf32>, vector<32x96xf32>, vector<8x96xf32> -> vector<8x96xf32>
    %12 = vector.broadcast %10 : vector<1x96xf32> to vector<8x96xf32>
    %13 = arith.addf %11, %12 : vector<8x96xf32>
    %cst_7 = arith.constant 0.000000e+00 : f32
    %14 = vector.broadcast %cst_7 : f32 to vector<8x96xf32>
    %15 = arith.maximumf %13, %14 : vector<8x96xf32>
    %16 = vector.extract_strided_slice %15 {offsets = [0, 0], sizes = [8, 32], strides = [1, 1]} : vector<8x96xf32> to vector<8x32xf32>
    %17 = vector.shape_cast %16 : vector<8x32xf32> to vector<1x8x32xf32>
    %18 = vector.extract_strided_slice %17 {offsets = [0, 0, 0], sizes = [1, 8, 8], strides = [1, 1, 1]} : vector<1x8x32xf32> to vector<1x8x8xf32>
    %19 = vector.extract_strided_slice %17 {offsets = [0, 0, 8], sizes = [1, 8, 8], strides = [1, 1, 1]} : vector<1x8x32xf32> to vector<1x8x8xf32>
    %20 = vector.extract_strided_slice %17 {offsets = [0, 0, 16], sizes = [1, 8, 8], strides = [1, 1, 1]} : vector<1x8x32xf32> to vector<1x8x8xf32>
    %21 = vector.extract_strided_slice %17 {offsets = [0, 0, 24], sizes = [1, 8, 8], strides = [1, 1, 1]} : vector<1x8x32xf32> to vector<1x8x8xf32>
    %22 = tpu.concatenate %18, %19, %20, %21 in 0 : vector<1x8x8xf32>, vector<1x8x8xf32>, vector<1x8x8xf32>, vector<1x8x8xf32> -> vector<4x8x8xf32>
    %23 = vector.extract_strided_slice %15 {offsets = [0, 32], sizes = [8, 32], strides = [1, 1]} : vector<8x96xf32> to vector<8x32xf32>
    %24 = vector.shape_cast %23 : vector<8x32xf32> to vector<1x8x32xf32>
    %25 = vector.extract_strided_slice %24 {offsets = [0, 0, 0], sizes = [1, 8, 8], strides = [1, 1, 1]} : vector<1x8x32xf32> to vector<1x8x8xf32>
    %26 = vector.extract_strided_slice %24 {offsets = [0, 0, 8], sizes = [1, 8, 8], strides = [1, 1, 1]} : vector<1x8x32xf32> to vector<1x8x8xf32>
    %27 = vector.extract_strided_slice %24 {offsets = [0, 0, 16], sizes = [1, 8, 8], strides = [1, 1, 1]} : vector<1x8x32xf32> to vector<1x8x8xf32>
    %28 = vector.extract_strided_slice %24 {offsets = [0, 0, 24], sizes = [1, 8, 8], strides = [1, 1, 1]} : vector<1x8x32xf32> to vector<1x8x8xf32>
    %29 = tpu.concatenate %25, %26, %27, %28 in 0 : vector<1x8x8xf32>, vector<1x8x8xf32>, vector<1x8x8xf32>, vector<1x8x8xf32> -> vector<4x8x8xf32>
    %30 = vector.extract_strided_slice %15 {offsets = [0, 64], sizes = [8, 32], strides = [1, 1]} : vector<8x96xf32> to vector<8x32xf32>
    %31 = vector.shape_cast %30 : vector<8x32xf32> to vector<1x8x32xf32>
    %32 = vector.extract_strided_slice %31 {offsets = [0, 0, 0], sizes = [1, 8, 8], strides = [1, 1, 1]} : vector<1x8x32xf32> to vector<1x8x8xf32>
    %33 = vector.extract_strided_slice %31 {offsets = [0, 0, 8], sizes = [1, 8, 8], strides = [1, 1, 1]} : vector<1x8x32xf32> to vector<1x8x8xf32>
    %34 = vector.extract_strided_slice %31 {offsets = [0, 0, 16], sizes = [1, 8, 8], strides = [1, 1, 1]} : vector<1x8x32xf32> to vector<1x8x8xf32>
    %35 = vector.extract_strided_slice %31 {offsets = [0, 0, 24], sizes = [1, 8, 8], strides = [1, 1, 1]} : vector<1x8x32xf32> to vector<1x8x8xf32>
    %36 = tpu.concatenate %32, %33, %34, %35 in 0 : vector<1x8x8xf32>, vector<1x8x8xf32>, vector<1x8x8xf32>, vector<1x8x8xf32> -> vector<4x8x8xf32>
    "tpu.trace_start"() <{level = 10 : i32, message = "bsd,btd->bst"}> : () -> ()
    %cst_8 = arith.constant dense<0.000000e+00> : vector<4x8x8xf32>
    %37 = tpu.matmul %22, %29, %cst_8 {dimension_numbers = #tpu.dot_dimension_numbers<[2], [2], [1], [1], [0, 0, 0, 1, 1, 1], [0], [0]>} : vector<4x8x8xf32>, vector<4x8x8xf32>, vector<4x8x8xf32> -> vector<4x8x8xf32>
    "tpu.trace_stop"() : () -> ()
    %cst_9 = arith.constant 0.176776692 : f32
    %38 = vector.broadcast %cst_9 : f32 to vector<4x8x8xf32>
    %39 = arith.mulf %37, %38 : vector<4x8x8xf32>
    %c0_10 = arith.constant 0 : index
    %c0_11 = arith.constant 0 : index
    %c0_12 = arith.constant 0 : index
    %c0_13 = arith.constant 0 : index
    %40 = vector.load %arg3[%c0_10, %c0_11, %c0_12, %c0_13] : memref<4x1x8x8xi8, #tpu.memory_space<vmem>>, vector<4x1x8x8xi8>
    %41 = arith.sitofp %40 : vector<4x1x8x8xi8> to vector<4x1x8x8xf32>
    %42 = vector.shape_cast %41 : vector<4x1x8x8xf32> to vector<4x8x8xf32>
    %cst_14 = arith.constant 0.000000e+00 : f32
    %43 = vector.broadcast %cst_14 : f32 to vector<4x8x8xf32>
    %44 = arith.cmpf oeq, %42, %43 : vector<4x8x8xf32>
    %cst_15 = arith.constant -1.000000e+09 : f32
    %45 = vector.broadcast %cst_15 : f32 to vector<4x8x8xf32>
    %46 = arith.select %44, %45, %39 : vector<4x8x8xi1>, vector<4x8x8xf32>
    %cst_16 = arith.constant dense<0xFF800000> : vector<4x8xf32>
    %47 = vector.multi_reduction <maximumf>, %46, %cst_16 [2] : vector<4x8x8xf32> to vector<4x8xf32>
    %48 = vector.shape_cast %47 : vector<4x8xf32> to vector<4x8x1xf32>
    %49 = vector.broadcast %48 : vector<4x8x1xf32> to vector<4x8x8xf32>
    %50 = arith.subf %46, %49 : vector<4x8x8xf32>
    %51 = math.exp %50 : vector<4x8x8xf32>
    %cst_17 = arith.constant dense<0.000000e+00> : vector<4x8xf32>
    %52 = vector.multi_reduction <add>, %51, %cst_17 [2] : vector<4x8x8xf32> to vector<4x8xf32>
    %53 = vector.shape_cast %52 : vector<4x8xf32> to vector<4x8x1xf32>
    %54 = tpu.reciprocal %53 {approx = true} : vector<4x8x1xf32> -> vector<4x8x1xf32>
    %55 = vector.broadcast %54 : vector<4x8x1xf32> to vector<4x8x8xf32>
    %56 = arith.mulf %51, %55 : vector<4x8x8xf32>
    "tpu.trace_start"() <{level = 10 : i32, message = "bst,btd->bsd"}> : () -> ()
    %cst_18 = arith.constant dense<0.000000e+00> : vector<4x8x8xf32>
    %57 = tpu.matmul %56, %36, %cst_18 {dimension_numbers = #tpu.dot_dimension_numbers<[2], [1], [1], [2], [0, 0, 0, 1, 1, 2], [0], [0]>} : vector<4x8x8xf32>, vector<4x8x8xf32>, vector<4x8x8xf32> -> vector<4x8x8xf32>
    "tpu.trace_stop"() : () -> ()
    %58 = vector.shape_cast %57 : vector<4x8x8xf32> to vector<4x1x8x8xf32>
    %59 = vector.extract_strided_slice %58 {offsets = [0, 0, 0, 0], sizes = [1, 1, 8, 8], strides = [1, 1, 1, 1]} : vector<4x1x8x8xf32> to vector<1x1x8x8xf32>
    %60 = vector.shape_cast %59 : vector<1x1x8x8xf32> to vector<1x8x8xf32>
    %61 = vector.extract_strided_slice %58 {offsets = [1, 0, 0, 0], sizes = [1, 1, 8, 8], strides = [1, 1, 1, 1]} : vector<4x1x8x8xf32> to vector<1x1x8x8xf32>
    %62 = vector.shape_cast %61 : vector<1x1x8x8xf32> to vector<1x8x8xf32>
    %63 = vector.extract_strided_slice %58 {offsets = [2, 0, 0, 0], sizes = [1, 1, 8, 8], strides = [1, 1, 1, 1]} : vector<4x1x8x8xf32> to vector<1x1x8x8xf32>
    %64 = vector.shape_cast %63 : vector<1x1x8x8xf32> to vector<1x8x8xf32>
    %65 = vector.extract_strided_slice %58 {offsets = [3, 0, 0, 0], sizes = [1, 1, 8, 8], strides = [1, 1, 1, 1]} : vector<4x1x8x8xf32> to vector<1x1x8x8xf32>
    %66 = vector.shape_cast %65 : vector<1x1x8x8xf32> to vector<1x8x8xf32>
    %67 = tpu.concatenate %60, %62, %64, %66 in 2 : vector<1x8x8xf32>, vector<1x8x8xf32>, vector<1x8x8xf32>, vector<1x8x8xf32> -> vector<1x8x32xf32>
    %68 = vector.shape_cast %67 : vector<1x8x32xf32> to vector<8x32xf32>
    %69 = arith.index_cast %arg1 : i32 to index
    %c0_19 = arith.constant 0 : index
    %c0_20 = arith.constant 0 : index
    %70 = vector.load %arg6[%69, %c0_19, %c0_20] : memref<2x32x32xf32, #tpu.memory_space<vmem>>, vector<1x32x32xf32>
    %71 = vector.shape_cast %70 : vector<1x32x32xf32> to vector<32x32xf32>
    %72 = arith.index_cast %arg1 : i32 to index
    %c0_21 = arith.constant 0 : index
    %c0_22 = arith.constant 0 : index
    %73 = vector.load %arg7[%72, %c0_21, %c0_22] : memref<2x1x32xf32, #tpu.memory_space<vmem>>, vector<1x1x32xf32>
    %74 = vector.shape_cast %73 : vector<1x1x32xf32> to vector<1x32xf32>
    %cst_23 = arith.constant dense<0.000000e+00> : vector<8x32xf32>
    %75 = tpu.matmul %68, %71, %cst_23 {dimension_numbers = #tpu.dot_dimension_numbers<[1], [0], [0], [1], [0, 0, 1, 1], [], []>} : vector<8x32xf32>, vector<32x32xf32>, vector<8x32xf32> -> vector<8x32xf32>
    %76 = vector.broadcast %74 : vector<1x32xf32> to vector<8x32xf32>
    %77 = arith.addf %75, %76 : vector<8x32xf32>
    %78 = arith.index_cast %arg1 : i32 to index
    %c0_24 = arith.constant 0 : index
    %c0_25 = arith.constant 0 : index
    %79 = vector.load %arg12[%78, %c0_24, %c0_25] : memref<2x1x32xf32, #tpu.memory_space<vmem>>, vector<1x1x32xf32>
    %80 = vector.shape_cast %79 : vector<1x1x32xf32> to vector<1x32xf32>
    %81 = arith.index_cast %arg1 : i32 to index
    %c0_26 = arith.constant 0 : index
    %c0_27 = arith.constant 0 : index
    %82 = vector.load %arg13[%81, %c0_26, %c0_27] : memref<2x1x32xf32, #tpu.memory_space<vmem>>, vector<1x1x32xf32>
    %83 = vector.shape_cast %82 : vector<1x1x32xf32> to vector<1x32xf32>
    %cst_28 = arith.constant dense<0.000000e+00> : vector<8xf32>
    %84 = vector.multi_reduction <add>, %77, %cst_28 [1] : vector<8x32xf32> to vector<8xf32>
    %85 = vector.shape_cast %84 : vector<8xf32> to vector<8x1xf32>
    %cst_29 = arith.constant 3.200000e+01 : f32
    %86 = vector.broadcast %cst_29 : f32 to vector<8x1xf32>
    %87 = arith.divf %85, %86 : vector<8x1xf32>
    %88 = vector.broadcast %87 : vector<8x1xf32> to vector<8x32xf32>
    %89 = arith.subf %77, %88 : vector<8x32xf32>
    %90 = arith.mulf %89, %89 : vector<8x32xf32>
    %cst_30 = arith.constant dense<0.000000e+00> : vector<8xf32>
    %91 = vector.multi_reduction <add>, %90, %cst_30 [1] : vector<8x32xf32> to vector<8xf32>
    %92 = vector.shape_cast %91 : vector<8xf32> to vector<8x1xf32>
    %cst_31 = arith.constant 3.200000e+01 : f32
    %93 = vector.broadcast %cst_31 : f32 to vector<8x1xf32>
    %94 = arith.divf %92, %93 : vector<8x1xf32>
    %95 = vector.broadcast %87 : vector<8x1xf32> to vector<8x32xf32>
    %96 = arith.subf %77, %95 : vector<8x32xf32>
    %cst_32 = arith.constant 9.99999974E-6 : f32
    %97 = vector.broadcast %cst_32 : f32 to vector<8x1xf32>
    %98 = arith.addf %94, %97 : vector<8x1xf32>
    %99 = math.rsqrt %98 : vector<8x1xf32>
    %100 = vector.broadcast %99 : vector<8x1xf32> to vector<8x32xf32>
    %101 = arith.mulf %96, %100 : vector<8x32xf32>
    %102 = vector.broadcast %80 : vector<1x32xf32> to vector<8x32xf32>
    %103 = arith.mulf %101, %102 : vector<8x32xf32>
    %104 = vector.broadcast %83 : vector<1x32xf32> to vector<8x32xf32>
    %105 = arith.addf %103, %104 : vector<8x32xf32>
    %106 = arith.index_cast %arg1 : i32 to index
    %c0_33 = arith.constant 0 : index
    %c0_34 = arith.constant 0 : index
    %107 = vector.load %arg8[%106, %c0_33, %c0_34] : memref<2x32x64xf32, #tpu.memory_space<vmem>>, vector<1x32x64xf32>
    %108 = vector.shape_cast %107 : vector<1x32x64xf32> to vector<32x64xf32>
    %109 = arith.index_cast %arg1 : i32 to index
    %c0_35 = arith.constant 0 : index
    %c0_36 = arith.constant 0 : index
    %110 = vector.load %arg9[%109, %c0_35, %c0_36] : memref<2x1x64xf32, #tpu.memory_space<vmem>>, vector<1x1x64xf32>
    %111 = vector.shape_cast %110 : vector<1x1x64xf32> to vector<1x64xf32>
    %cst_37 = arith.constant dense<0.000000e+00> : vector<8x64xf32>
    %112 = tpu.matmul %105, %108, %cst_37 {dimension_numbers = #tpu.dot_dimension_numbers<[1], [0], [0], [1], [0, 0, 1, 1], [], []>} : vector<8x32xf32>, vector<32x64xf32>, vector<8x64xf32> -> vector<8x64xf32>
    %113 = vector.broadcast %111 : vector<1x64xf32> to vector<8x64xf32>
    %114 = arith.addf %112, %113 : vector<8x64xf32>
    %cst_38 = arith.constant 0.000000e+00 : f32
    %115 = vector.broadcast %cst_38 : f32 to vector<8x64xf32>
    %116 = arith.maximumf %114, %115 : vector<8x64xf32>
    %117 = arith.index_cast %arg1 : i32 to index
    %c0_39 = arith.constant 0 : index
    %c0_40 = arith.constant 0 : index
    %118 = vector.load %arg10[%117, %c0_39, %c0_40] : memref<2x64x32xf32, #tpu.memory_space<vmem>>, vector<1x64x32xf32>
    %119 = vector.shape_cast %118 : vector<1x64x32xf32> to vector<64x32xf32>
    %120 = arith.index_cast %arg1 : i32 to index
    %c0_41 = arith.constant 0 : index
    %c0_42 = arith.constant 0 : index
    %121 = vector.load %arg11[%120, %c0_41, %c0_42] : memref<2x1x32xf32, #tpu.memory_space<vmem>>, vector<1x1x32xf32>
    %122 = vector.shape_cast %121 : vector<1x1x32xf32> to vector<1x32xf32>
    %cst_43 = arith.constant dense<0.000000e+00> : vector<8x32xf32>
    %123 = tpu.matmul %116, %119, %cst_43 {dimension_numbers = #tpu.dot_dimension_numbers<[1], [0], [0], [1], [0, 0, 1, 1], [], []>} : vector<8x64xf32>, vector<64x32xf32>, vector<8x32xf32> -> vector<8x32xf32>
    %124 = vector.broadcast %122 : vector<1x32xf32> to vector<8x32xf32>
    %125 = arith.addf %123, %124 : vector<8x32xf32>
    %cst_44 = arith.constant dense<0.000000e+00> : vector<8xf32>
    %126 = vector.multi_reduction <add>, %125, %cst_44 [1] : vector<8x32xf32> to vector<8xf32>
    %127 = vector.shape_cast %126 : vector<8xf32> to vector<8x1xf32>
    %cst_45 = arith.constant 3.200000e+01 : f32
    %128 = vector.broadcast %cst_45 : f32 to vector<8x1xf32>
    %129 = arith.divf %127, %128 : vector<8x1xf32>
    %130 = vector.broadcast %129 : vector<8x1xf32> to vector<8x32xf32>
    %131 = arith.subf %125, %130 : vector<8x32xf32>
    %132 = arith.mulf %131, %131 : vector<8x32xf32>
    %cst_46 = arith.constant dense<0.000000e+00> : vector<8xf32>
    %133 = vector.multi_reduction <add>, %132, %cst_46 [1] : vector<8x32xf32> to vector<8xf32>
    %134 = vector.shape_cast %133 : vector<8xf32> to vector<8x1xf32>
    %cst_47 = arith.constant 3.200000e+01 : f32
    %135 = vector.broadcast %cst_47 : f32 to vector<8x1xf32>
    %136 = arith.divf %134, %135 : vector<8x1xf32>
    %137 = vector.broadcast %129 : vector<8x1xf32> to vector<8x32xf32>
    %138 = arith.subf %125, %137 : vector<8x32xf32>
    %cst_48 = arith.constant 9.99999974E-6 : f32
    %139 = vector.broadcast %cst_48 : f32 to vector<8x1xf32>
    %140 = arith.addf %136, %139 : vector<8x1xf32>
    %141 = math.rsqrt %140 : vector<8x1xf32>
    %142 = vector.broadcast %141 : vector<8x1xf32> to vector<8x32xf32>
    %143 = arith.mulf %138, %142 : vector<8x32xf32>
    %144 = vector.broadcast %80 : vector<1x32xf32> to vector<8x32xf32>
    %145 = arith.mulf %143, %144 : vector<8x32xf32>
    %146 = vector.broadcast %83 : vector<1x32xf32> to vector<8x32xf32>
    %147 = arith.addf %145, %146 : vector<8x32xf32>
    %cst_49 = arith.constant 0.707106769 : f32
    %148 = vector.broadcast %cst_49 : f32 to vector<8x32xf32>
    %149 = arith.mulf %147, %148 : vector<8x32xf32>
    %150 = vector.shape_cast %149 : vector<8x32xf32> to vector<1x8x32xf32>
    %c0_50 = arith.constant 0 : index
    %c0_51 = arith.constant 0 : index
    %c0_52 = arith.constant 0 : index
    %151 = vector.load %arg14[%c0_50, %c0_51, %c0_52] : memref<1x8x32xf32, #tpu.memory_space<vmem>>, vector<1x8x32xf32>
    tpu.vector_store %arg14[%c0_50, %c0_51, %c0_52], %150 {strides = array<i32>} : memref<1x8x32xf32, #tpu.memory_space<vmem>>, vector<1x8x32xf32>,
    return
  }
  func.func @transform_0(%arg0: i32, %arg1: i32) -> (i32, i32, i32) {
    %c0_i32 = arith.constant 0 : i32
    %c0_i32_0 = arith.constant 0 : i32
    %c0_i32_1 = arith.constant 0 : i32
    return %arg0, %c0_i32, %c0_i32_0 : i32, i32, i32
  }
  func.func @transform_1(%arg0: i32, %arg1: i32) -> (i32, i32, i32, i32) {
    %c0_i32 = arith.constant 0 : i32
    %c0_i32_0 = arith.constant 0 : i32
    %c0_i32_1 = arith.constant 0 : i32
    %c0_i32_2 = arith.constant 0 : i32
    return %c0_i32, %arg0, %c0_i32_0, %c0_i32_1 : i32, i32, i32, i32
  }
  func.func @transform_2(%arg0: i32, %arg1: i32) -> (i32, i32, i32) {
    %c0_i32 = arith.constant 0 : i32
    %c0_i32_0 = arith.constant 0 : i32
    %c0_i32_1 = arith.constant 0 : i32
    %c0_i32_2 = arith.constant 0 : i32
    return %c0_i32, %c0_i32_0, %c0_i32_1 : i32, i32, i32
  }
  func.func @transform_3(%arg0: i32, %arg1: i32) -> (i32, i32, i32) {
    %c0_i32 = arith.constant 0 : i32
    %c0_i32_0 = arith.constant 0 : i32
    %c0_i32_1 = arith.constant 0 : i32
    %c0_i32_2 = arith.constant 0 : i32
    return %c0_i32, %c0_i32_0, %c0_i32_1 : i32, i32, i32
  }
  func.func @transform_4(%arg0: i32, %arg1: i32) -> (i32, i32, i32) {
    %c0_i32 = arith.constant 0 : i32
    %c0_i32_0 = arith.constant 0 : i32
    %c0_i32_1 = arith.constant 0 : i32
    %c0_i32_2 = arith.constant 0 : i32
    return %c0_i32, %c0_i32_0, %c0_i32_1 : i32, i32, i32
  }
  func.func @transform_5(%arg0: i32, %arg1: i32) -> (i32, i32, i32) {
    %c0_i32 = arith.constant 0 : i32
    %c0_i32_0 = arith.constant 0 : i32
    %c0_i32_1 = arith.constant 0 : i32
    %c0_i32_2 = arith.constant 0 : i32
    return %c0_i32, %c0_i32_0, %c0_i32_1 : i32, i32, i32
  }
  func.func @transform_6(%arg0: i32, %arg1: i32) -> (i32, i32, i32) {
    %c0_i32 = arith.constant 0 : i32
    %c0_i32_0 = arith.constant 0 : i32
    %c0_i32_1 = arith.constant 0 : i32
    %c0_i32_2 = arith.constant 0 : i32
    return %c0_i32, %c0_i32_0, %c0_i32_1 : i32, i32, i32
  }
  func.func @transform_7(%arg0: i32, %arg1: i32) -> (i32, i32, i32) {
    %c0_i32 = arith.constant 0 : i32
    %c0_i32_0 = arith.constant 0 : i32
    %c0_i32_1 = arith.constant 0 : i32
    %c0_i32_2 = arith.constant 0 : i32
    return %c0_i32, %c0_i32_0, %c0_i32_1 : i32, i32, i32
  }
  func.func @transform_8(%arg0: i32, %arg1: i32) -> (i32, i32, i32) {
    %c0_i32 = arith.constant 0 : i32
    %c0_i32_0 = arith.constant 0 : i32
    %c0_i32_1 = arith.constant 0 : i32
    %c0_i32_2 = arith.constant 0 : i32
    return %c0_i32, %c0_i32_0, %c0_i32_1 : i32, i32, i32
  }
  func.func @transform_9(%arg0: i32, %arg1: i32) -> (i32, i32, i32) {
    %c0_i32 = arith.constant 0 : i32
    %c0_i32_0 = arith.constant 0 : i32
    %c0_i32_1 = arith.constant 0 : i32
    %c0_i32_2 = arith.constant 0 : i32
    return %c0_i32, %c0_i32_0, %c0_i32_1 : i32, i32, i32
  }
  func.func @transform_10(%arg0: i32, %arg1: i32) -> (i32, i32, i32) {
    %c0_i32 = arith.constant 0 : i32
    %c0_i32_0 = arith.constant 0 : i32
    %c0_i32_1 = arith.constant 0 : i32
    %c0_i32_2 = arith.constant 0 : i32
    return %c0_i32, %c0_i32_0, %c0_i32_1 : i32, i32, i32
  }
  func.func @transform_11(%arg0: i32, %arg1: i32) -> (i32, i32, i32) {
    %c0_i32 = arith.constant 0 : i32
    %c0_i32_0 = arith.constant 0 : i32
    %c0_i32_1 = arith.constant 0 : i32
    %c0_i32_2 = arith.constant 0 : i32
    return %c0_i32, %c0_i32_0, %c0_i32_1 : i32, i32, i32
  }
  func.func @transform_12(%arg0: i32, %arg1: i32) -> (i32, i32, i32) {
    %c0_i32 = arith.constant 0 : i32
    %c0_i32_0 = arith.constant 0 : i32
    %c0_i32_1 = arith.constant 0 : i32
    return %arg0, %c0_i32, %c0_i32_0 : i32, i32, i32
  }
}

</mosaic_0001>

<bundles_post_ra>
// kernel: tpu_custom_call.1
= control target key start
LH: loop header
LB: loop body
LE: loop exit
PB: predicated region body
PF: predicated region fallthrough
CT: control target
= control target key end

     0   :  { %s2682_s0 = inlined_call_operand.hbm [shape: f32[2,8,32], index: 0, kind: input, shape index: {}]   ;;  %s2683_s1 = inlined_call_operand.hbm [shape: s8[4,2,8,8], index: 1, kind: input, shape index: {}]   ;;  %s2684_s2 = inlined_call_operand.vmem [shape: f32[2,32,96], index: 2, kind: input, shape index: {}]   ;;  %s2685_s3 = inlined_call_operand.vmem [shape: f32[2,1,96], index: 3, kind: input, shape index: {}]   ;;  %s2686_s4 = inlined_call_operand.vmem [shape: f32[2,32,32], index: 4, kind: input, shape index: {}]   ;;  %s2687_s5 = inlined_call_operand.hbm [shape: f32[2,1,32], index: 5, kind: input, shape index: {}]   ;;  %s2688_s6 = inlined_call_operand.vmem [shape: f32[2,32,64], index: 6, kind: input, shape index: {}]   ;;  %s2689_s7 = inlined_call_operand.vmem [shape: f32[2,1,64], index: 7, kind: input, shape index: {}]   ;;  %s2690_s8 = inlined_call_operand.vmem [shape: f32[2,64,32], index: 8, kind: input, shape index: {}]   ;;  %s2691_s9 = inlined_call_operand.vmem [shape: f32[2,1,32], index: 9, kind: input, shape index: {}]   ;;  %s2692_s10 = inlined_call_operand.vmem [shape: f32[2,1,32], index: 10, kind: input, shape index: {}]   ;;  %s2693_s11 = inlined_call_operand.hbm [shape: f32[2,1,32], index: 11, kind: input, shape index: {}]   ;;  %s2694_s12 = inlined_call_operand.hbm [shape: f32[2,8,32], index: 12, kind: output, shape index: {}]  }
   0x1   :  { %2703 = sst [smem:[#allocation25_spill]] %s2682_s0 }
   0x2   :  { %2704 = sst [smem:[#allocation26_spill]] %s2687_s5 }
   0x3   :  { %2705 = sst [smem:[#allocation27_spill]] %s2688_s6 }
   0x4   :  { %2706 = sst [smem:[#allocation28_spill]] %s2690_s8 }
   0x5   :  { %2707 = sst [smem:[#allocation29_spill]] %s2691_s9 }
   0x6   :  { %2708 = sst [smem:[#allocation30_spill]] %s2693_s11 }
   0x7   :  { %2709 = sst [smem:[#allocation31_spill]] %s2694_s12 }
   0x8   :  { %17 = vsyncpa [#allocation3], 0 }
   0x9   :  { %19 = vsyncpa [#allocation3 + $0x1], 0 }
   0xa   :  { %20 = vsyncpa [#allocation6], 0 }
   0xb   :  { %22 = vsyncpa [#allocation6 + $0x1], 0 }
   0xc   :  { %23 = vsyncpa [#allocation9], 0 }
   0xd   :  { %24 = vsyncpa [#allocation4], 0 }
   0xe   :  { %26 = vsyncpa [#allocation4 + $0x1], 0  ;;  %s2165_s21 = smov 0   ;;  %s2167_s22 = smov 0  }
   0xf   :  { %s2169_s23 = smov 0   ;;  %s2171_s24 = smov 0  }
  0x10   :  { %s2173_s25 = smov 0   ;;  %s2175_s26 = smov 0  }
  0x11   :  { %s2177_s27 = smov 0   ;;  %s2179_s28 = smov 0  }
  0x12 LB: > { %2710 = sst [smem:[#allocation16_spill]] %s2052_s21  ;;  %s2206_s29 = sadd.s32 4294967295, %s2080_s28   ;;  %s2080_s28 = sphi %s2179_s28, %s32_s28   ;;  %s2076_s27 = sphi %s2177_s27, %s2744_s27   ;;  %s2072_s26 = sphi %s2175_s26, %s2739_s26   ;;  %s2068_s25 = sphi %s2173_s25, %s2743_s25   ;;  %s2064_s24 = sphi %s2171_s24, %s2738_s24   ;;  %s2060_s23 = sphi %s2169_s23, %s2737_s23   ;;  %s2056_s22 = sphi %s2167_s22, %s2742_s22   ;;  %s2052_s21 = sphi %s2165_s21, %s2741_s21  }
  0x13   : > { %2711 = sst [smem:[#allocation17_spill]] %s2060_s23  ;;  %p1646_p0 = scmp.ge.s32.totalorder %s2080_s28, 1 }
  0x14   : > { %2712 = sst [smem:[#allocation18_spill]] %s2068_s25  ;;  %p65_p1 = scmp.eq.s32.totalorder %s2206_s29, 0 }
  0x15   : > { %2713 = sst [smem:[#allocation19_spill]] %s2072_s26  ;;  %p337_p2 = scmp.lt.s32.totalorder %s2080_s28, 5 }
  0x16   : > { %s2714_s5 = sld [smem:[#allocation26_spill]]  ;;  %s2082_s16 = smov [#allocation7]  }
  0x17   : > { %p2214_p3 = pnand %p1646_p0, %p337_p2  ;;  %s359_s17 = sshll.u32 %s2082_s16, 4  ;;  %s360_s17 = int_to_ptr.vmem [resolvable:$true] %s359_s17 }
  0x18   : > { %s2716_s11 = sld [smem:[#allocation30_spill]]  ;;  %s2083_s30 = smov 16  }
  0x19   : > { %p1706_p4 = pneg %p2214_p3  ;;  %s2084_s13 = smov 1  }
  0x1a   : > { %s2085_s16 = smov [#allocation8]   ;;  %s1645_s12 = sadd.s32 4294967294, %s2080_s28  }
  0x1b   : > { %p1707_p5 = pnand %p1706_p4, %p65_p1  ;;  %s41_s25 = sadd.s32 1, %s2072_s26 }
  0x1c   : > { %s357_s14 = sshll.u32 %s2714_s5, 4  ;;  %s388_s5 = sshll.u32 %s2085_s16, 4  ;;  %s358_s14 = int_to_ptr.hbm [resolvable:$true] %s357_s14  ;;  %s389_s5 = int_to_ptr.vmem [resolvable:$true] %s388_s5 }
  0x1d   : > { %1709 = dma.hbm_to_vmem [thread:$0]  (!%p1707_p5), %s358_s14, 32, %s360_s17, [#allocation6], %s2083_s30, %s2083_s30, %s2084_s13  }
  0x1e   : > { %s386_s20 = sshll.u32 %s2716_s11, 4  ;;  %p42_p6 = scmp.ge.s32.totalorder %s41_s25, 2  ;;  %s387_s20 = int_to_ptr.hbm [resolvable:$true] %s386_s20 }
  0x1f   : > { %1712 = dma.hbm_to_vmem [thread:$0]  (!%p1707_p5), %s387_s20, 32, %s389_s5, [#allocation9], %s2083_s30, %s2083_s30, %s2084_s13  }
  0x20   : > { %s44_s18 = sadd.s32 1, %s2076_s27  ;;  %s51_s19 = sadd.s32 1, %s2060_s23 }
  0x21   : > { %p58_p7 = scmp.ne.s32.totalorder %s2060_s23, %s2056_s22  ;;  %s2746_s25 = smov (%p42_p6, %s41_s25), 0 }
  0x22   : > { %2717 = sst [smem:[#allocation20_spill]] %s2746_s25  ;;  %s2748_s18 = smov (!%p42_p6, %s44_s18), %s2076_s27 }
  0x23   : > { %p59_p8 = scmp.eq.s32.totalorder %s2080_s28, 0  ;;  %p64_p9 = scmp.ne.s32.totalorder %s2056_s22, %s2052_s21 }
  0x24   : > { %p46_p10 = scmp.ge.s32.totalorder %s2748_s18, 2  ;;  %p324_p11 = scmp.eq.s32.totalorder %s2206_s29, 3 }
  0x25   : > { %p2238_p12 = por %p59_p8, %p58_p7  ;;  %p2244_p13 = por %p65_p1, %p64_p9 }
  0x26   : > { %s2750_s18 = smov (%p46_p10, %s2748_s18), 0  ;;  %p2250_p0 = por %p324_p11, %p58_p7 }
  0x27   : > { %2720 = sst [smem:[#allocation21_spill]] %s2750_s18  ;;  %p330_p2 = scmp.eq.s32.totalorder %s1645_s12, 3 }
  0x28   : > { %s2721_s17 = scalar_select %p2250_p0, 1, 0 }
  0x29   : > { %s48_s20 = ssub.s32 %s2076_s27, %s2750_s18  ;;  %p1726_p4 = scmp.lt.s32.totalorder %s2080_s28, 4 }
  0x2a   : > { %2722 = sst [smem:[#allocation22_spill]] %s2721_s17  ;;  %p49_p5 = scmp.eq.s32.totalorder %s48_s20, 0 }
  0x2b   : > { %p2257_p6 = por %p330_p2, %p64_p9  ;;  %s402_s13 = sand.u32 1, %s2060_s23  }
  0x2c   : > { %s1651_s16 = sshll.u32 %s2076_s27, 3  ;;  %s1650_s25 = sshll.u32 %s402_s13, 3 }
  0x2d   : > { %s2723_s30 = scalar_select %p2257_p6, 1, 0 }
  0x2e   : > { %s2264_s11 = scalar_select %p49_p5, %s2060_s23, %s51_s19  }
  0x2f   : > { %2724 = sst [smem:[#allocation23_spill]] %s2723_s30  ;;  %s406_s12 = scalar_lea.vmem [#allocation2], %s1650_s25 }
  0x30   : > { %2725 = sst [smem:[#allocation24_spill]] %s2264_s11  ;;  %s414_s18 = sshll.u32 %s406_s12, 4  ;;  %s415_s18 = int_to_ptr.vmem [resolvable:$true] %s414_s18 }
  0x31   : > { %s2726_s0 = sld [smem:[#allocation25_spill]]  ;;  %p2273_p7 = pnand %p1726_p4, %p2238_p12 }
  0x32   : > { %s425_s19 = scalar_lea.vmem [#allocation5], %s1650_s25  ;;  %s421_s23 = sand.u32 1, %s2080_s28  }
  0x33   : > { %s432_s11 = sshll.u32 %s425_s19, 4  ;;  %s403_s30 = scalar_lea.sflag [#allocation3], %s402_s13  ;;  %s433_s11 = int_to_ptr.vmem [resolvable:$true] %s432_s11 }
  0x34   : > { %s1653_s21 = sshll.u32 %s2076_s27, 1  ;;  %s422_s12 = scalar_lea.sflag [#allocation6], %s421_s23 }
  0x35   : > { %s2087_s8 = smov 32   ;;  %s2088_s6 = smov 2  }
  0x36   : > { %s2289_s25 = sand.u32 (!%p2214_p3), 1, %s2056_s22  }
  0x37   : > { %s410_s17 = scalar_lea.hbm %s2726_s0, %s1651_s16  ;;  %s429_s16 = scalar_lea.hbm %s2683_s1, %s1653_s21 }
  0x38   : > { %s412_s9 = sshll.u32 %s410_s17, 4  ;;  %s430_s5 = sshll.u32 %s429_s16, 4  ;;  %s413_s9 = int_to_ptr.hbm [resolvable:$true] %s412_s9  ;;  %s431_s5 = int_to_ptr.hbm [resolvable:$true] %s430_s5 }
  0x39   : > { %1716 = dma.hbm_to_vmem [thread:$0]  (!%p2273_p7), %s413_s9, 128, %s415_s18, %s403_s30  }
  0x3a   : > { %s2086_s0 = smov 64   ;;  %444 = sbr.rel (%p2214_p3) target bundleno = 2084 (0x824), region = 68 }
  0x3b   : > { %1719 = dma.hbm_to_vmem [thread:$0]  (!%p2273_p7), %s431_s5, 128, %s433_s11, %s422_s12, %s2086_s0, %s2087_s8, %s2088_s6  }
  0x3c   : > { %s2292_s9 = sshll.u32 (!%p2214_p3), %s2289_s25, 3  ;;  %s447_s18 = scalar_lea.sflag (!%p2214_p3), [#allocation3], %s2289_s25 }
  0x3d   : > { %s450_s30 = scalar_lea.vmem (!%p2214_p3), [#allocation2], %s2292_s9 }
  0x3f   : > { %2031 = dma.done.wait (%p2244_p13), %s447_s18, 128  }
  0x40   : > { %2033 = vsyncadd (%p2244_p13), %s447_s18, 4294967168  ;;  %s456_s0 = sand.u32 1, %s2206_s29   ;;  %s460_s8 = scalar_lea.vmem [#allocation5], %s2292_s9 }
  0x41   : > { %s457_s6 = scalar_lea.sflag [#allocation6], %s456_s0 }
  0x42   : > { %2035 = dma.done.wait (%p2244_p13), %s457_s6, 128  }
  0x43   : > { %2037 = vsyncadd (%p2244_p13), %s457_s6, 4294967168 }
  0x44   : > { %2039 = dma.done.wait (%p65_p1), [#allocation6], 32  }
  0x45   : > { %2041 = vsyncadd (%p65_p1), [#allocation6], 4294967264 }
  0x46   : > { %2043 = dma.done.wait (%p65_p1), [#allocation9], 32  }
  0x47   : > { %2045 = vsyncadd (%p65_p1), [#allocation9], 4294967264  ;;  %s2315_s11 = scalar_lea.vmem [#allocation10], %s2292_s9  ;;  %p1660_p3 = scmp.ne.s32.totalorder %s2064_s24, 0 }
  0x49   : > { %520 = sbr.rel (%p1660_p3) target bundleno = 80 (0x50), region = 88 }
  0x4e   : > { %v521_v0 = vld [vmem:[%s450_s30] sm:$0xff]  ;;  %vm522_vm0 = vcmask 261120  }
  0x4f   : > { %523 = vst.msk [vmem:[%s2315_s11] sm:$0xff] %vm522_vm0, %v521_v0 }
  0x50 PF: > { %s2320_s23 = sshll.u32 %s2064_s24, 5  ;;  %s531_s29 = scalar_lea.vmem %s2685_s3, %s2064_s24  ;;  %vm536_vm1 = vcmask 261120   ;;  %v2093_v10 = vmov 1983009808   ;;  %vm572_vm2 = vcmask 1047556   ;;  %vm926_vm3 = vcmask 64512  }
  0x51   : > { %s526_s19 = scalar_lea.vmem %s2684_s2, %s2320_s23  ;;  %v1822_v6 = vld [vmem:[%s531_s29] ss:$0 sm:$0xff]  ;;  %s2089_s21 = smov 104   ;;  %v577_v11 = vunpack.c.l.s4 %v2093_v10  ;;  %v2094_v19 = vmov 1934713408   ;;  %vm1314_vm8 = vcmask 130048  }
  0x52   : > { %v530_v1 = vld [vmem:[%s526_s19 + $0x18] sm:$0xff]  ;;  %v529_v2 = vld [vmem:[%s526_s19 + $0x10] sm:$0xff]  ;;  %v528_v3 = vld [vmem:[%s526_s19 + $0x8] sm:$0xff]  ;;  %s2090_s26 = smov 120   ;;  %s2091_s17 = smov 96   ;;  %v601_v20 = vunpack.c.l.s4 %v2094_v19  ;;  %vm1316_vm9 = vcmask 195584  }
  0x53   : > { %552 = vmatpush.msra.mxu0 %v530_v1  ;;  %v527_v4 = vld [vmem:[%s526_s19] sm:$0xff]  ;;  %s2092_s16 = smov 112   ;;  %v2346_v16 = vunpack.c.0.s8 %v577_v11  ;;  %s2095_s5 = smov 64   ;;  %vm1441_vm14 = vcmask 523264  }
  0x54   : > { %v2357_v25 = vunpack.c.0.s8 %v601_v20  ;;  %s1323_s12 = scalar_lea.vmem [#allocation7], %s2064_s24  ;;  %s2096_s9 = smov 16  }
  0x55   : > { %553 = vmatpush.msra.mxu0 %v529_v2  ;;  %s2097_s18 = smov 8   ;;  %s2098_s30 = smov 24  }
  0x56   : > { %v524_v5 = vld [vmem:[%s2315_s11] sm:$0xff]  ;;  %s1351_s29 = scalar_lea.vmem %s2692_s10, %s2064_s24  ;;  %s1353_s13 = scalar_lea.vmem [#allocation8], %s2064_s24 }
  0x57   : > { %554 = vmatpush.msra.mxu0 %v528_v3  ;;  %s2730_s14 = sld [smem:[#allocation29_spill]] }
  0x59   : > { %555 = vmatpush.msra.mxu0 %v527_v4 }
  0x5a   : > { %1662 = vmatmul.msk.f32.vlgmr.msra.gmra.mxu0 %vm536_vm1, %v524_v5 }
  0x5d   : > { %s1436_s20 = scalar_lea.vmem %s2730_s14, %s2064_s24 }
  0xd7   : > { %v557_v7 = vpop.f32.mrf.mxu0 }
  0xd8   : > { %v558_v8 = vadd.f32 %v1822_v6, %v557_v7 }
  0xda   : > { %v2332_v9 = vmax.f32 %v558_v8, 0.0 }
  0xdc   : > { %568 = vrot.lane.b32.xlu1 %v2332_v9, %s2089_s21  ;;  %562 = vrot.lane.b32.xlu0 %v2332_v9, %s2090_s26  ;;  %v574_v22 = vrot.slane %v2332_v9, 4  ;;  %s1397_s21 = scalar_lea.vmem %s2689_s7, %s2064_s24 }
  0xe4   : > { %682 = vrot.lane.b32.xlu1 %v2332_v9, %s2091_s17  ;;  %565 = vrot.lane.b32.xlu0 %v2332_v9, %s2092_s16  ;;  %s2728_s16 = sld [smem:[#allocation27_spill]] }
 0x14e   : > { %v2338_v12 = vpop.permute.xlu1 %568  ;;  %v2340_v13 = vpop.permute.xlu0 %562 }
 0x14f   : > { %v584_v14 = vrot.slane %v2338_v12, 4  ;;  %v586_v15 = vrot.slane %v2340_v13, 4  ;;  %688 = vrot.lane.b32.xlu0 %v2338_v12, %s2091_s17  ;;  %684 = vrot.lane.b32.xlu2 %v2340_v13, %s2091_s17 }
 0x151   : > { %v585_v17 = vsel %vm572_vm2, %v584_v14, %v2340_v13  ;;  %v587_v18 = vsel %vm572_vm2, %v2338_v12, %v586_v15 }
 0x152   : > { %v595_v21 = vperm.slane %v587_v18, %v2346_v16  ;;  %v591_v23 = vperm.slane %v585_v17, %v2346_v16 }
 0x154   : > { %v608_v28 = vrot.slane %v595_v21, 4  ;;  %v596_v31 = vrot.slane %v591_v23, 4 }
 0x156   : > { %v2355_v24 = vpop.permute.xlu0 %565 }
 0x157   : > { %v571_v26 = vrot.slane %v2355_v24, 4  ;;  %v575_v27 = vsel %vm572_vm2, %v2355_v24, %v574_v22  ;;  %686 = vrot.lane.b32.xlu2 %v2355_v24, %s2091_s17  ;;  %v683_v22 = vpop.permute.xlu1 %682 }
 0x158   : > { %v583_v29 = vperm.slane %v575_v27, %v2346_v16 }
 0x159   : > { %v573_v30 = vsel %vm572_vm2, %v571_v26, %v2332_v9  ;;  %v696_v26 = vrot.slane %v683_v22, 4 }
 0x15a   : > { %v579_v32 = vperm.slane %v573_v30, %v2346_v16  ;;  %v609_v33 = vsel %vm572_vm2, %v608_v28, %v583_v29  ;;  %v610_v34 = vrot.slane %v583_v29, 4 }
 0x15b   : > { %v615_v35 = vperm.slane %v609_v33, %v2357_v25 }
 0x15c   : > { %v597_v36 = vsel %vm572_vm2, %v596_v31, %v579_v32  ;;  %v598_v37 = vrot.slane %v579_v32, 4  ;;  %v611_v38 = vsel %vm572_vm2, %v595_v21, %v610_v34 }
 0x15d   : > { %v603_v39 = vperm.slane %v597_v36, %v2357_v25  ;;  %v619_v40 = vperm.slane %v611_v38, %v2357_v25  ;;  %v624_v43 = vrot.slane %v615_v35, 4 }
 0x15e   : > { %v599_v41 = vsel %vm572_vm2, %v591_v23, %v598_v37 }
 0x15f   : > { %v607_v42 = vperm.slane %v599_v41, %v2357_v25  ;;  %v626_v44 = vrot.slane %v619_v40, 4  ;;  %v620_v46 = vrot.slane %v603_v39, 4  ;;  %v625_v51 = vsel %vm572_vm2, 0.0, %v624_v43 }
 0x161   : > { %v627_v45 = vsel %vm572_vm2, 0.0, %v626_v44  ;;  %v622_v47 = vrot.slane %v607_v42, 4  ;;  %v639_v48 = vsel %vm572_vm2, %v626_v44, %v615_v35  ;;  %v621_v58 = vsel %vm572_vm2, 0.0, %v620_v46 }
 0x162   : > { %v644_v49 = vrot.slane %v627_v45, 4  ;;  %v643_v50 = vperm.slane %v639_v48, %v2346_v16 }
 0x163   : > { %v623_v52 = vsel %vm572_vm2, 0.0, %v622_v47  ;;  %v628_v53 = vsel %vm572_vm2, %v622_v47, %v603_v39 }
 0x164   : > { %v632_v54 = vperm.slane %v628_v53, %v2346_v16  ;;  %v633_v55 = vrot.slane %v623_v52, 4  ;;  %v645_v56 = vsel %vm572_vm2, %v644_v49, %v625_v51  ;;  %v664_v57 = vrot.slane %v643_v50, 4 }
 0x165   : > { %v649_v59 = vperm.slane %v645_v56, %v2346_v16 }
 0x166   : > { %v634_v60 = vsel %vm572_vm2, %v633_v55, %v621_v58  ;;  %v652_v61 = vrot.slane %v632_v54, 4 }
 0x167   : > { %v638_v62 = vperm.slane %v634_v60, %v2346_v16  ;;  %v665_v63 = vsel %vm572_vm2, %v649_v59, %v664_v57  ;;  %v662_v0 = vrot.slane %v649_v59, 4 }
 0x168   : > { %v673_v1 = vperm.slane %v665_v63, %v2357_v25 }
 0x169   : > { %v653_v2 = vsel %vm572_vm2, %v638_v62, %v652_v61  ;;  %v650_v3 = vrot.slane %v638_v62, 4  ;;  %v663_v4 = vsel %vm572_vm2, %v662_v0, %v643_v50 }
 0x16a   : > { %v661_v5 = vperm.slane %v653_v2, %v2357_v25  ;;  %v678_v6 = vrot.slane %v673_v1, 4  ;;  %v669_v7 = vperm.slane %v663_v4, %v2357_v25 }
 0x16b   : > { %v651_v8 = vsel %vm572_vm2, %v650_v3, %v632_v54 }
 0x16c   : > { %v2395_v10 = vsel %vm572_vm2, %v678_v6, %v661_v5  ;;  %v657_v11 = vperm.slane %v651_v8, %v2357_v25  ;;  %v674_v14 = vrot.slane %v669_v7, 4  ;;  %v680_v15 = vrot.slane %v661_v5, 4 }
 0x16e   : > { %v2399_v17 = vsel %vm572_vm2, %v674_v14, %v657_v11  ;;  %v676_v18 = vrot.slane %v657_v11, 4  ;;  %v2402_v19 = vsel %vm572_vm2, %v673_v1, %v680_v15 }
 0x170   : > { %v2405_v20 = vsel %vm572_vm2, %v669_v7, %v676_v18 }
 0x1a9   : > { %v685_v21 = vpop.permute.xlu2 %684 }
 0x1aa   : > { %v708_v31 = vrot.slane %v685_v21, 4 }
 0x1b1   : > { %v687_v23 = vpop.permute.xlu2 %686 }
 0x1b2   : > { %v694_v27 = vrot.slane %v687_v23, 4  ;;  %v697_v28 = vsel %vm572_vm2, %v687_v23, %v696_v26 }
 0x1b3   : > { %v705_v30 = vperm.slane %v697_v28, %v2346_v16 }
 0x1b4   : > { %v695_v29 = vsel %vm572_vm2, %v694_v27, %v683_v22 }
 0x1b5   : > { %v701_v32 = vperm.slane %v695_v29, %v2346_v16  ;;  %v732_v36 = vrot.slane %v705_v30, 4 }
 0x1b7   : > { %v720_v39 = vrot.slane %v701_v32, 4 }
 0x1c1   : > { %v689_v33 = vpop.permute.xlu0 %688 }
 0x1c2   : > { %v706_v34 = vrot.slane %v689_v33, 4  ;;  %v709_v35 = vsel %vm572_vm2, %v689_v33, %v708_v31 }
 0x1c3   : > { %v717_v37 = vperm.slane %v709_v35, %v2346_v16  ;;  %v1684_v35 = vld [vmem:[%s460_s8] sm:$0xff]   ;;  %s1318_s8 = scalar_lea.vmem %s2686_s4, %s2320_s23 }
 0x1c4   : > { %v707_v38 = vsel %vm572_vm2, %v706_v34, %v685_v21 }
 0x1c5   : > { %v713_v40 = vperm.slane %v707_v38, %v2346_v16  ;;  %v730_v41 = vrot.slane %v717_v37, 4  ;;  %v733_v42 = vsel %vm572_vm2, %v717_v37, %v732_v36  ;;  %v1685_v36 = vunpack.c.0.s8 %v1684_v35 }
 0x1c6   : > { %v741_v43 = vperm.slane %v733_v42, %v2357_v25 }
 0x1c7   : > { %v718_v44 = vrot.slane %v713_v40, 4  ;;  %v721_v45 = vsel %vm572_vm2, %v713_v40, %v720_v39  ;;  %v731_v46 = vsel %vm572_vm2, %v730_v41, %v705_v30  ;;  %v1043_v37 = vcvt.s32.f32 %v1685_v36 }
 0x1c8   : > { %v729_v47 = vperm.slane %v721_v45, %v2357_v25  ;;  %v737_v48 = vperm.slane %v731_v46, %v2357_v25  ;;  %v748_v49 = vrot.slane %v741_v43, 4  ;;  %v1686_v40 = vunpack.c.1.s8 %v1684_v35 }
 0x1c9   : > { %v719_v50 = vsel %vm572_vm2, %v718_v44, %v701_v32  ;;  %vm1047_vm4 = vcmp.eq.f32.partialorder %v1043_v37, 0.0  ;;  %v1690_v41 = vunpack.c.3.s8 %v1684_v35 }
 0x1ca   : > { %v725_v51 = vperm.slane %v719_v50, %v2357_v25  ;;  %v744_v52 = vrot.slane %v729_v47, 4  ;;  %v746_v53 = vrot.slane %v737_v48, 4  ;;  %v749_v54 = vsel %vm572_vm2, 0.0, %v748_v49 }
 0x1cb   : > { %v761_v55 = vsel %vm572_vm2, %v748_v49, %v737_v48  ;;  %v766_v56 = vrot.slane %v749_v54, 4  ;;  %v1046_v45 = vcvt.s32.f32 %v1690_v41 }
 0x1cc   : > { %v745_v57 = vsel %vm572_vm2, 0.0, %v744_v52  ;;  %v747_v58 = vsel %vm572_vm2, 0.0, %v746_v53  ;;  %v765_v59 = vperm.slane %v761_v55, %v2346_v16  ;;  %v742_v60 = vrot.slane %v725_v51, 4 }
 0x1cd   : > { %v755_v61 = vrot.slane %v745_v57, 4  ;;  %v750_v62 = vsel %vm572_vm2, %v744_v52, %v725_v51  ;;  %v767_v63 = vsel %vm572_vm2, %v766_v56, %v747_v58  ;;  %vm1050_vm7 = vcmp.eq.f32.partialorder %v1046_v45, 0.0 }
 0x1ce   : > { %v743_v0 = vsel %vm572_vm2, 0.0, %v742_v60  ;;  %v754_v1 = vperm.slane %v750_v62, %v2346_v16  ;;  %v771_v2 = vperm.slane %v767_v63, %v2346_v16  ;;  %v786_v3 = vrot.slane %v765_v59, 4 }
 0x1cf   : > { %v756_v4 = vsel %vm572_vm2, %v755_v61, %v743_v0  ;;  %v1812_v56 = vpack.i.bf16 %v2340_v13, %v2332_v9  ;;  %v1817_v57 = vpack.i.bf16 %v2338_v12, %v2355_v24 }
 0x1d0   : > { %v760_v5 = vperm.slane %v756_v4, %v2346_v16  ;;  %v774_v6 = vrot.slane %v754_v1, 4  ;;  %v787_v7 = vsel %vm572_vm2, %v771_v2, %v786_v3  ;;  %v784_v8 = vrot.slane %v771_v2, 4 }
 0x1d1   : > { %v795_v11 = vperm.slane %v787_v7, %v2357_v25 }
 0x1d2   : > { %v775_v14 = vsel %vm572_vm2, %v760_v5, %v774_v6  ;;  %v772_v15 = vrot.slane %v760_v5, 4  ;;  %v785_v18 = vsel %vm572_vm2, %v784_v8, %v765_v59 }
 0x1d3   : > { %v783_v21 = vperm.slane %v775_v14, %v2357_v25  ;;  %v800_v22 = vrot.slane %v795_v11, 4  ;;  %v791_v23 = vperm.slane %v785_v18, %v2357_v25 }
 0x1d4   : > { %v773_v26 = vsel %vm572_vm2, %v772_v15, %v754_v1 }
 0x1d5   : > { %v801_v27 = vsel %vm572_vm2, %v800_v22, %v783_v21  ;;  %v779_v28 = vperm.slane %v773_v26, %v2357_v25  ;;  %v796_v29 = vrot.slane %v791_v23, 4  ;;  %v802_v30 = vrot.slane %v783_v21, 4 }
 0x1d6   : > { %1667 = vmatpush.xpose.msk.msra.mxu3 %vm926_vm3, %v801_v27 }
 0x1d7   : > { %v797_v31 = vsel %vm572_vm2, %v796_v29, %v779_v28  ;;  %v803_v32 = vsel %vm572_vm2, %v795_v11, %v802_v30  ;;  %v798_v33 = vrot.slane %v779_v28, 4 }
 0x1d8   : > { %1663 = vmatpush.xpose.msk.msra.mxu1 %vm926_vm3, %v797_v31 }
 0x1d9   : > { %1668 = vmatmul.msk.f32.vlgmr.msra.gmra.mxu3 %vm926_vm3, %v2395_v10  ;;  %v799_v34 = vsel %vm572_vm2, %v791_v23, %v798_v33  ;;  %v1689_v10 = vunpack.c.2.s8 %v1684_v35 }
 0x1da   : > { %1665 = vmatpush.xpose.msk.msra.mxu2 %vm926_vm3, %v799_v34 }
 0x1db   : > { %1664 = vmatmul.msk.f32.vlgmr.msra.gmra.mxu1 %vm926_vm3, %v2399_v17  ;;  %v1045_v39 = vcvt.s32.f32 %v1689_v10 }
 0x1dc   : > { %1669 = vmatpush.xpose.msk.msrb.mxu1 %vm926_vm3, %v803_v32 }
 0x1dd   : > { %1666 = vmatmul.msk.f32.vlgmr.msra.gmra.mxu2 %vm926_vm3, %v2405_v20  ;;  %vm1049_vm5 = vcmp.eq.f32.partialorder %v1045_v39, 0.0  ;;  %v1044_v20 = vcvt.s32.f32 %v1686_v40 }
 0x1df   : > { %vm1048_vm6 = vcmp.eq.f32.partialorder %v1044_v20, 0.0 }
 0x1e3   : > { %1670 = vmatmul.msk.f32.vlgmr.msrb.gmra.mxu1 %vm926_vm3, %v2402_v19 }
 0x258   : > { %v950_v38 = vpop.f32.mrf.mxu1 }
 0x259   : > { %v1031_v42 = vmul.f32 0.17677669, %v950_v38 }
 0x25b   : > { %v1051_v43 = vsel %vm1047_vm4, -1e+09, %v1031_v42 }
 0x25c   : > { %v1002_v44 = vpop.f32.mrf.mxu3  ;;  %v1055_v17 = vsel %vm926_vm3, %v1051_v43, -inf }
 0x25d   : > { %v1033_v46 = vmul.f32 0.17677669, %v1002_v44  ;;  %1056 = vmax.xlane.f32.xlu2 %v1055_v17 }
 0x25f   : > { %v1053_v19 = vsel %vm1049_vm5, -1e+09, %v1033_v46 }
 0x260   : > { %v976_v47 = vpop.f32.mrf.mxu2  ;;  %v1028_v48 = vpop.f32.mrf.mxu1  ;;  %v1061_v49 = vsel %vm926_vm3, %v1053_v19, -inf }
 0x261   : > { %v1032_v50 = vmul.f32 0.17677669, %v976_v47  ;;  %v1034_v51 = vmul.f32 0.17677669, %v1028_v48  ;;  %1062 = vmax.xlane.f32.xlu1 %v1061_v49 }
 0x263   : > { %v1052_v52 = vsel %vm1048_vm6, -1e+09, %v1032_v50  ;;  %v1054_v53 = vsel %vm1050_vm7, -1e+09, %v1034_v51 }
 0x264   : > { %v1058_v54 = vsel %vm926_vm3, %v1052_v52, -inf  ;;  %v1064_v55 = vsel %vm926_vm3, %v1054_v53, -inf }
 0x265   : > { %1059 = vmax.xlane.f32.xlu0 %v1058_v54  ;;  %1065 = vmax.xlane.f32.xlu2 %v1064_v55 }
 0x27a   : > { %1813 = vrot.lane.b32.xlu1 %v1812_v56, %s2095_s5 }
 0x27d   : > { %1818 = vrot.lane.b32.xlu2 %v1817_v57, %s2095_s5  ;;  %s1392_s5 = scalar_lea.vmem %s2728_s16, %s2320_s23  ;;  %s2733_s16 = sld [smem:[#allocation31_spill]] }
 0x2d0   : > { %v1057_v58 = vpop.xlane.xlu2 %1056 }
 0x2d1   : > { %v1067_v59 = vsub.f32 %v1051_v43, %v1057_v58 }
 0x2d3   : > { %v1071_v60 = vmul.f32 1.442695, %v1067_v59 }
 0x2d4   : > { %v1063_v61 = vpop.xlane.xlu1 %1062 }
 0x2d5   : > { %1828 = vpow2.f32 %v1071_v60  ;;  %v1069_v62 = vsub.f32 %v1053_v19, %v1063_v61 }
 0x2d7   : > { %v1075_v63 = vmul.f32 1.442695, %v1069_v62 }
 0x2d8   : > { %v1060_v0 = vpop.xlane.xlu0 %1059  ;;  %v1066_v1 = vpop.xlane.xlu2 %1065 }
 0x2d9   : > { %v1070_v2 = vsub.f32 %v1054_v53, %v1066_v1  ;;  %1830 = vpow2.f32 %v1075_v63  ;;  %v1068_v9 = vsub.f32 %v1052_v52, %v1060_v0 }
 0x2db   : > { %v2469_v3 = vpop.eup %1828  ;;  %v1077_v13 = vmul.f32 1.442695, %v1070_v2  ;;  %v1073_v12 = vmul.f32 1.442695, %v1068_v9 }
 0x2dc   : > { %v1079_v4 = vsel %vm926_vm3, %v2469_v3, 0.0 }
 0x2dd   : > { %1080 = vadd.xlane.f32.xlu0 %v1079_v4  ;;  %1832 = vpow2.f32 %v1077_v13 }
 0x2de   : > { %1834 = vpow2.f32 %v1073_v12 }
 0x2df   : > { %v2473_v24 = vpop.eup %1830 }
 0x2e0   : > { %v1085_v6 = vsel %vm926_vm3, %v2473_v24, 0.0  ;;  %v1819_v8 = vpop.permute.xlu2 %1818 }
 0x2e1   : > { %v1821_v14 = vunpack.i.h.bf16 %v1819_v8  ;;  %v1820_v15 = vunpack.i.l.bf16 %v1819_v8 }
 0x2e3   : > { %v2475_v5 = vpop.eup %1832  ;;  %v828_v22 = vrot.slane %v1821_v14, 4  ;;  %v816_v23 = vrot.slane %v1820_v15, 4 }
 0x2e4   : > { %v1088_v7 = vsel %vm926_vm3, %v2475_v5, 0.0  ;;  %v2481_v11 = vpop.eup %1834 }
 0x2e5   : > { %1086 = vadd.xlane.f32.xlu0 %v1085_v6  ;;  %1089 = vadd.xlane.f32.xlu1 %v1088_v7  ;;  %v1082_v21 = vsel %vm926_vm3, %v2481_v11, 0.0 }
 0x2ec   : > { %v1814_v18 = vpop.permute.xlu1 %1813 }
 0x2ed   : > { %v1816_v26 = vunpack.i.h.bf16 %v1814_v18  ;;  %v1815_v27 = vunpack.i.l.bf16 %v1814_v18  ;;  %1083 = vadd.xlane.f32.xlu0 %v1082_v21 }
 0x2ef   : > { %v830_v28 = vrot.slane %v1816_v26, 4  ;;  %v817_v29 = vsel %vm572_vm2, %v816_v23, %v1815_v27  ;;  %v818_v30 = vrot.slane %v1815_v27, 4  ;;  %v829_v31 = vsel %vm572_vm2, %v828_v22, %v1816_v26 }
 0x2f0   : > { %v823_v32 = vperm.slane %v817_v29, %v2346_v16  ;;  %v835_v33 = vperm.slane %v829_v31, %v2346_v16 }
 0x2f1   : > { %v819_v34 = vsel %vm572_vm2, %v1820_v15, %v818_v30  ;;  %v831_v35 = vsel %vm572_vm2, %v1821_v14, %v830_v28 }
 0x2f2   : > { %v827_v36 = vperm.slane %v819_v34, %v2346_v16  ;;  %v839_v37 = vperm.slane %v831_v35, %v2346_v16  ;;  %v840_v10 = vrot.slane %v835_v33, 4  ;;  %v842_v38 = vrot.slane %v823_v32, 4 }
 0x2f4   : > { %v841_v39 = vsel %vm572_vm2, %v840_v10, %v823_v32  ;;  %v843_v40 = vsel %vm572_vm2, %v835_v33, %v842_v38  ;;  %v852_v41 = vrot.slane %v839_v37, 4  ;;  %v854_v42 = vrot.slane %v827_v36, 4 }
 0x2f5   : > { %v847_v43 = vperm.slane %v841_v39, %v2357_v25  ;;  %v851_v44 = vperm.slane %v843_v40, %v2357_v25 }
 0x2f6   : > { %v853_v17 = vsel %vm572_vm2, %v852_v41, %v827_v36  ;;  %v855_v20 = vsel %vm572_vm2, %v839_v37, %v854_v42 }
 0x2f7   : > { %v859_v45 = vperm.slane %v853_v17, %v2357_v25  ;;  %v863_v46 = vperm.slane %v855_v20, %v2357_v25  ;;  %v864_v19 = vrot.slane %v847_v43, 4  ;;  %v866_v47 = vrot.slane %v851_v44, 4 }
 0x2f9   : > { %v867_v48 = vsel %vm572_vm2, 0.0, %v866_v47  ;;  %v868_v49 = vrot.slane %v859_v45, 4  ;;  %v870_v50 = vrot.slane %v863_v46, 4  ;;  %v872_v52 = vsel %vm572_vm2, %v866_v47, %v847_v43 }
 0x2fa   : > { %v877_v51 = vrot.slane %v867_v48, 4  ;;  %v865_v53 = vsel %vm572_vm2, 0.0, %v864_v19  ;;  %v876_v55 = vperm.slane %v872_v52, %v2346_v16 }
 0x2fb   : > { %v871_v54 = vsel %vm572_vm2, 0.0, %v870_v50  ;;  %v883_v56 = vsel %vm572_vm2, %v870_v50, %v859_v45  ;;  %v869_v60 = vsel %vm572_vm2, 0.0, %v868_v49 }
 0x2fc   : > { %v888_v57 = vrot.slane %v871_v54, 4  ;;  %v878_v58 = vsel %vm572_vm2, %v877_v51, %v865_v53  ;;  %v887_v59 = vperm.slane %v883_v56, %v2346_v16  ;;  %v896_v62 = vrot.slane %v876_v55, 4 }
 0x2fd   : > { %v882_v61 = vperm.slane %v878_v58, %v2346_v16 }
 0x2fe   : > { %v889_v63 = vsel %vm572_vm2, %v888_v57, %v869_v60  ;;  %v908_v0 = vrot.slane %v887_v59, 4 }
 0x2ff   : > { %v893_v1 = vperm.slane %v889_v63, %v2346_v16  ;;  %v894_v2 = vrot.slane %v882_v61, 4  ;;  %v897_v9 = vsel %vm572_vm2, %v882_v61, %v896_v62 }
 0x300   : > { %v905_v13 = vperm.slane %v897_v9, %v2357_v25 }
 0x301   : > { %v895_v4 = vsel %vm572_vm2, %v894_v2, %v876_v55  ;;  %v906_v12 = vrot.slane %v893_v1, 4  ;;  %v909_v6 = vsel %vm572_vm2, %v893_v1, %v908_v0 }
 0x302   : > { %v901_v7 = vperm.slane %v895_v4, %v2357_v25  ;;  %v917_v8 = vperm.slane %v909_v6, %v2357_v25  ;;  %v924_v15 = vrot.slane %v905_v13, 4 }
 0x303   : > { %v907_v14 = vsel %vm572_vm2, %v906_v12, %v887_v59 }
 0x304   : > { %v913_v18 = vperm.slane %v907_v14, %v2357_v25  ;;  %v920_v21 = vrot.slane %v901_v7, 4  ;;  %v922_v22 = vrot.slane %v917_v8, 4  ;;  %v925_v28 = vsel %vm572_vm2, %v917_v8, %v924_v15 }
 0x306   : > { %v921_v23 = vsel %vm572_vm2, %v913_v18, %v920_v21  ;;  %v923_v26 = vsel %vm572_vm2, %v922_v22, %v905_v13  ;;  %v918_v27 = vrot.slane %v913_v18, 4 }
 0x307   : > { %1140 = vmatpush.msrb.mxu3 %v921_v23  ;;  %1163 = vmatpush.msra.mxu1 %v923_v26 }
 0x308   : > { %v919_v29 = vsel %vm572_vm2, %v918_v27, %v901_v7 }
 0x309   : > { %1186 = vmatpush.msrb.mxu1 %v925_v28  ;;  %1117 = vmatpush.msrb.mxu2 %v919_v29 }
 0x350   : > { %v1081_v30 = vpop.xlane.xlu0 %1080 }
 0x351   : > { %1836 = vrcp.f32 %v1081_v30 }
 0x357   : > { %v1837_v31 = vpop.eup %1836 }
 0x358   : > { %v1087_v32 = vpop.xlane.xlu0 %1086  ;;  %v1095_v33 = vmul.f32 %v1837_v31, %v2469_v3  ;;  %v1090_v34 = vpop.xlane.xlu1 %1089 }
 0x359   : > { %1838 = vrcp.f32 %v1087_v32 }
 0x35a   : > { %1671 = vmatmul.msk.f32.vlgmr.msrb.gmra.mxu2 %vm926_vm3, %v1095_v33  ;;  %1840 = vrcp.f32 %v1090_v34 }
 0x35f   : > { %v1839_v35 = vpop.eup %1838 }
 0x360   : > { %v1097_v36 = vmul.f32 %v1839_v35, %v2473_v24  ;;  %v1084_v37 = vpop.xlane.xlu0 %1083  ;;  %v1841_v10 = vpop.eup %1840 }
 0x361   : > { %1842 = vrcp.f32 %v1084_v37  ;;  %v1098_v39 = vmul.f32 %v1841_v10, %v2475_v5 }
 0x362   : > { %1673 = vmatmul.msk.f32.vlgmr.msra.gmra.mxu1 %vm926_vm3, %v1097_v36 }
 0x367   : > { %v1843_v38 = vpop.eup %1842 }
 0x368   : > { %v1096_v40 = vmul.f32 %v1843_v38, %v2481_v11 }
 0x36a   : > { %1672 = vmatmul.msk.f32.vlgmr.msrb.gmra.mxu3 %vm926_vm3, %v1096_v40  ;;  %1674 = vmatmul.msk.f32.vlgmr.msrb.gmra.mxu1 %vm926_vm3, %v1098_v39 }
 0x3dd   : > { %v1119_v41 = vpop.f32.mrf.mxu2 }
 0x3de   : > { %v1193_v43 = vrot.slane %v1119_v41, 4 }
 0x3df   : > { %v1165_v3 = vpop.f32.mrf.mxu1 }
 0x3e0   : > { %v1191_v42 = vrot.slane %v1165_v3, 4  ;;  %v1194_v17 = vsel %vm572_vm2, %v1165_v3, %v1193_v43  ;;  %v1321_v43 = vld [vmem:[%s1318_s8 + $0x10] sm:$0xff] }
 0x3e1   : > { %v1202_v5 = vperm.slane %v1194_v17, %v2346_v16 }
 0x3e2   : > { %v1192_v24 = vsel %vm572_vm2, %v1191_v42, %v1119_v41 }
 0x3e3   : > { %v1198_v20 = vperm.slane %v1192_v24, %v2346_v16  ;;  %v1229_v50 = vrot.slane %v1202_v5, 4  ;;  %v1320_v24 = vld [vmem:[%s1318_s8 + $0x8] sm:$0xff] }
 0x3e5   : > { %v1217_v47 = vrot.slane %v1198_v20, 4 }
 0x3e7   : > { %v1188_v44 = vpop.f32.mrf.mxu1 }
 0x3e8   : > { %v1203_v45 = vrot.slane %v1188_v44, 4 }
 0x3ed   : > { %v1142_v46 = vpop.f32.mrf.mxu3 }
 0x3ee   : > { %v1204_v11 = vsel %vm572_vm2, %v1203_v45, %v1142_v46  ;;  %v1205_v19 = vrot.slane %v1142_v46, 4 }
 0x3ef   : > { %v1210_v48 = vperm.slane %v1204_v11, %v2346_v16 }
 0x3f0   : > { %v1206_v49 = vsel %vm572_vm2, %v1188_v44, %v1205_v19  ;;  %v1319_v44 = vld [vmem:[%s1318_s8] sm:$0xff] }
 0x3f1   : > { %v1214_v51 = vperm.slane %v1206_v49, %v2346_v16  ;;  %v1215_v52 = vrot.slane %v1210_v48, 4  ;;  %v1218_v53 = vsel %vm572_vm2, %v1210_v48, %v1217_v47  ;;  %v1823_v19 = vld [vmem:[%s1323_s12] ss:$0 sm:$0xff]  ;;  %s1677_s12 = sshll.u32 %s2064_s24, 6 }
 0x3f2   : > { %v1226_v54 = vperm.slane %v1218_v53, %v2357_v25 }
 0x3f3   : > { %v1216_v55 = vsel %vm572_vm2, %v1215_v52, %v1198_v20  ;;  %v1227_v56 = vrot.slane %v1214_v51, 4  ;;  %v1230_v57 = vsel %vm572_vm2, %v1214_v51, %v1229_v50  ;;  %v2099_v50 = vmov 32.0  }
 0x3f4   : > { %v1222_v58 = vperm.slane %v1216_v55, %v2357_v25  ;;  %v1238_v59 = vperm.slane %v1230_v57, %v2357_v25  ;;  %v1241_v60 = vrot.slane %v1226_v54, 4  ;;  %1844 = vrcp.f32 %v2099_v50 }
 0x3f5   : > { %v1228_v61 = vsel %vm572_vm2, %v1227_v56, %v1202_v5 }
 0x3f6   : > { %v1234_v62 = vperm.slane %v1228_v61, %v2357_v25  ;;  %v1239_v63 = vrot.slane %v1222_v58, 4  ;;  %v1242_v0 = vsel %vm572_vm2, 0.0, %v1241_v60  ;;  %v1245_v1 = vrot.slane %v1238_v59, 4 }
 0x3f7   : > { %v1247_v2 = vsel %vm572_vm2, %v1241_v60, %v1222_v58  ;;  %v1252_v9 = vrot.slane %v1242_v0, 4  ;;  %v1394_v0 = vld [vmem:[%s1392_s5 + $0x8] sm:$0xff] }
 0x3f8   : > { %v1240_v13 = vsel %vm572_vm2, 0.0, %v1239_v63  ;;  %v1243_v4 = vrot.slane %v1234_v62, 4  ;;  %v1246_v12 = vsel %vm572_vm2, 0.0, %v1245_v1  ;;  %v1251_v6 = vperm.slane %v1247_v2, %v2346_v16  ;;  %v1395_v63 = vld [vmem:[%s1392_s5 + $0x10] sm:$0xff] }
 0x3f9   : > { %v1263_v7 = vrot.slane %v1246_v12, 4  ;;  %v1253_v8 = vsel %vm572_vm2, %v1252_v9, %v1240_v13  ;;  %v1258_v14 = vsel %vm572_vm2, %v1245_v1, %v1234_v62  ;;  %v1396_v62 = vld [vmem:[%s1392_s5 + $0x18] sm:$0xff]  ;;  %v1393_v1 = vld [vmem:[%s1392_s5] sm:$0xff] }
 0x3fa   : > { %v1244_v15 = vsel %vm572_vm2, 0.0, %v1243_v4  ;;  %v1257_v18 = vperm.slane %v1253_v8, %v2346_v16  ;;  %v1262_v21 = vperm.slane %v1258_v14, %v2346_v16  ;;  %v1271_v22 = vrot.slane %v1251_v6, 4  ;;  %v1845_v51 = vpop.eup %1844  ;;  %1417 = vmatpush.msra.mxu3 %v1396_v62 }
 0x3fb   : > { %v1264_v23 = vsel %vm572_vm2, %v1263_v7, %v1244_v15  ;;  %v1359_v52 = vmul.f32 32.0, %v1845_v51  ;;  %vm1363_vm10 = vweird.f32 %v1845_v51 }
 0x3fc   : > { %v1268_v26 = vperm.slane %v1264_v23, %v2346_v16  ;;  %v1283_v27 = vrot.slane %v1262_v21, 4  ;;  %v1269_v28 = vrot.slane %v1257_v18, 4  ;;  %v1272_v29 = vsel %vm572_vm2, %v1257_v18, %v1271_v22  ;;  %1418 = vmatpush.msra.mxu3 %v1395_v63 }
 0x3fd   : > { %v1280_v36 = vperm.slane %v1272_v29, %v2357_v25  ;;  %v1360_v53 = vsub.f32 1.0, %v1359_v52  ;;  %v1825_v29 = vld [vmem:[%s1353_s13] ss:$0 sm:$0xff]  ;;  %s2731_s13 = sld [smem:[#allocation18_spill]] }
 0x3fe   : > { %v1284_v30 = vsel %vm572_vm2, %v1268_v26, %v1283_v27  ;;  %v1270_v31 = vsel %vm572_vm2, %v1269_v28, %v1251_v6  ;;  %v1281_v32 = vrot.slane %v1268_v26, 4  ;;  %1419 = vmatpush.msra.mxu3 %v1394_v0  ;;  %v1824_v26 = vld [vmem:[%s1351_s29] ss:$0 sm:$0xff] }
 0x3ff   : > { %v1292_v33 = vperm.slane %v1284_v30, %v2357_v25  ;;  %v1276_v34 = vperm.slane %v1270_v31, %v2357_v25  ;;  %v1299_v41 = vrot.slane %v1280_v36, 4  ;;  %v1361_v54 = vmul.f32 %v1845_v51, %v1360_v53 }
 0x400   : > { %v1282_v35 = vsel %vm572_vm2, %v1281_v32, %v1262_v21  ;;  %1420 = vmatpush.msra.mxu3 %v1393_v1 }
 0x401   : > { %v1297_v37 = vrot.slane %v1292_v33, 4  ;;  %v1288_v16 = vperm.slane %v1282_v35, %v2357_v25  ;;  %v1295_v10 = vrot.slane %v1276_v34, 4  ;;  %v1300_v42 = vsel %vm572_vm2, %v1292_v33, %v1299_v41  ;;  %v1322_v25 = vld [vmem:[%s1318_s8 + $0x18] sm:$0xff]  ;;  %v1826_v35 = vld [vmem:[%s1397_s21] ss:$0 sm:$0xff]  ;;  %s1990_s8 = scalar_lea.hbm %s2733_s16, 16 }
 0x402   : > { %1343 = vmatpush.msra.mxu2 %v1322_v25  ;;  %v1362_v55 = vadd.f32 %v1845_v51, %v1361_v54 }
 0x403   : > { %v1298_v38 = vsel %vm572_vm2, %v1297_v37, %v1280_v36  ;;  %v1293_v39 = vrot.slane %v1288_v16, 4  ;;  %v1296_v40 = vsel %vm572_vm2, %v1288_v16, %v1295_v10  ;;  %v1827_v10 = vld [vmem:[%s1436_s20] ss:$0 sm:$0xff]  ;;  %s1680_s24 = sshll.u32 %s2731_s13, 3 }
 0x404   : > { %1306 = vrot.lane.b32.xlu0 %v1298_v38, %s2096_s9  ;;  %1302 = vrot.lane.b32.xlu2 %v1296_v40, %s2097_s18  ;;  %v2587_v56 = vsel %vm1363_vm10, %v1845_v51, %v1362_v55  ;;  %s1502_s5 = scalar_lea.hbm %s2733_s16, %s1680_s24  ;;  %s1492_s18 = scalar_lea.sflag [#allocation4], %s2289_s25 }
 0x405   : > { %v1294_v3 = vsel %vm572_vm2, %v1293_v39, %v1276_v34  ;;  %1344 = vmatpush.msra.mxu2 %v1321_v43  ;;  %s1506_s9 = sshll.u32 %s1502_s5, 4  ;;  %s1507_s9 = int_to_ptr.hbm [resolvable:$true] %s1506_s9 }
 0x407   : > { %1345 = vmatpush.msra.mxu2 %v1320_v24 }
 0x409   : > { %1346 = vmatpush.msra.mxu2 %v1319_v44 }
 0x40c   : > { %1310 = vrot.lane.b32.xlu2 %v1300_v42, %s2098_s30  ;;  %s2729_s30 = sld [smem:[#allocation28_spill]] }
 0x412   : > { %s2604_s0 = scalar_lea.vmem %s2729_s30, %s1677_s12  ;;  %s1504_s12 = sshll.u32 %s2315_s11, 4  ;;  %s1505_s12 = int_to_ptr.vmem [resolvable:$true] %s1504_s12 }
 0x413   : > { %v1435_v2 = vld [vmem:[%s2604_s0 + $0x38] sm:$0xff]  ;;  %v1434_v9 = vld [vmem:[%s2604_s0 + $0x30] sm:$0xff]  ;;  %v1433_v13 = vld [vmem:[%s2604_s0 + $0x28] sm:$0xff]  ;;  %s1984_s30 = sshra.s32 %s1507_s9, 4  ;;  %s1985_s30 = int_to_ptr.hbm [resolvable:$true] %s1984_s30 }
 0x414   : > { %1453 = vmatpush.msrb.mxu0 %v1435_v2  ;;  %v1432_v6 = vld [vmem:[%s2604_s0 + $0x20] sm:$0xff]  ;;  %v1431_v8 = vld [vmem:[%s2604_s0 + $0x18] sm:$0xff]  ;;  %v1430_v32 = vld [vmem:[%s2604_s0 + $0x10] sm:$0xff]  ;;  %p1991_p10 = scmp.lt.s32.totalorder %s1985_s30, %s2733_s16 }
 0x415   : > { %v1429_v33 = vld [vmem:[%s2604_s0 + $0x8] sm:$0xff]  ;;  %v1428_v34 = vld [vmem:[%s2604_s0] sm:$0xff]  ;;  %s1986_s0 = scalar_lea.hbm %s1985_s30, 8 }
 0x416   : > { %1454 = vmatpush.msrb.mxu0 %v1434_v9  ;;  %p1987_p1 = scmp.ne.s32.totalorder %s1985_s30, %s1986_s0  ;;  %p1992_p11 = scmp.lt.s32.totalorder %s1990_s8, %s1986_s0 }
 0x418   : > { %1455 = vmatpush.msrb.mxu0 %v1433_v13  ;;  %p1988_p8 = pnand %p1987_p1, %p2250_p0  ;;  %p1993_p12 = por %p1992_p11, %p1991_p10 }
 0x41a   : > { %1456 = vmatpush.msrb.mxu0 %v1432_v6  ;;  %p1989_p9 = pneg %p1988_p8 }
 0x41c   : > { %1457 = vmatpush.msrb.mxu0 %v1431_v8  ;;  %p1994_p13 = pnand %p1993_p12, %p1989_p9 }
 0x41e   : > { %1458 = vmatpush.msrb.mxu0 %v1430_v32 }
 0x420   : > { %1459 = vmatpush.msrb.mxu0 %v1429_v33 }
 0x422   : > { %1460 = vmatpush.msrb.mxu0 %v1428_v34 }
 0x45e   : > { %v1303_v17 = vpop.permute.xlu2 %1302 }
 0x45f   : > { %v1313_v20 = vsel %vm926_vm3, %v1294_v3, %v1303_v17 }
 0x466   : > { %v1311_v5 = vpop.permute.xlu2 %1310 }
 0x476   : > { %v1307_v45 = vpop.permute.xlu0 %1306 }
 0x477   : > { %v1315_v46 = vsel %vm1314_vm8, %v1313_v20, %v1307_v45 }
 0x478   : > { %v1317_v11 = vsel %vm1316_vm9, %v1315_v46, %v1311_v5 }
 0x479   : > { %1675 = vmatmul.msk.f32.vlgmr.msra.gmra.mxu2 %vm536_vm1, %v1317_v11 }
 0x4fc   : > { %v1348_v47 = vpop.f32.mrf.mxu2 }
 0x4fd   : > { %v1349_v48 = vadd.f32 %v1823_v19, %v1348_v47 }
 0x4ff   : > { %v1355_v49 = vsel %vm536_vm1, %v1349_v48, 0.0 }
 0x500   : > { %1356 = vadd.xlane.f32.xlu2 %v1355_v49 }
 0x573   : > { %v1357_v57 = vpop.xlane.xlu2 %1356 }
 0x574   : > { %v1365_v58 = vmul.f32 %v2587_v56, %v1357_v57 }
 0x576   : > { %v1366_v59 = vsub.f32 %v1349_v48, %v1365_v58 }
 0x578   : > { %v1367_v60 = vmul.f32 %v1366_v59, %v1366_v59 }
 0x57a   : > { %v1368_v61 = vsel %vm536_vm1, %v1367_v60, 0.0 }
 0x57b   : > { %1369 = vadd.xlane.f32.xlu0 %v1368_v61 }
 0x5ee   : > { %v1370_v4 = vpop.xlane.xlu0 %1369 }
 0x5ef   : > { %v1371_v12 = vmul.f32 %v1370_v4, %v2587_v56 }
 0x5f1   : > { %v1372_v7 = vadd.f32 1e-05, %v1371_v12 }
 0x5f3   : > { %1846 = vrsqrt.f32 %v1372_v7  ;;  %vm1379_vm12 = vweird.f32 %v1372_v7 }
 0x5f9   : > { %v1847_v14 = vpop.eup %1846 }
 0x5fa   : > { %v1374_v15 = vmul.f32 %v1847_v14, %v1372_v7  ;;  %vm1380_vm11 = vweird.f32 %v1847_v14 }
 0x5fb   : > { %vm1381_vm13 = vmor %vm1379_vm12, %vm1380_vm11 }
 0x5fc   : > { %v1375_v18 = vmul.f32 %v1847_v14, %v1374_v15 }
 0x5fe   : > { %v1376_v21 = vmul.f32 0.5, %v1375_v18 }
 0x600   : > { %v1377_v22 = vsub.f32 1.5, %v1376_v21 }
 0x602   : > { %v1378_v23 = vmul.f32 %v1847_v14, %v1377_v22 }
 0x604   : > { %v1382_v27 = vsel %vm1381_vm13, %v1847_v14, %v1378_v23 }
 0x605   : > { %v1383_v28 = vmul.f32 %v1382_v27, %v1366_v59 }
 0x607   : > { %v1387_v30 = vmul.f32 %v1824_v26, %v1383_v28 }
 0x609   : > { %v1391_v31 = vadd.f32 %v1825_v29, %v1387_v30 }
 0x60b   : > { %1676 = vmatmul.msk.f32.vlgmr.msra.gmra.mxu3 %vm536_vm1, %v1391_v31 }
 0x68e   : > { %v1422_v36 = vpop.f32.mrf.mxu3 }
 0x68f   : > { %v1423_v37 = vadd.f32 %v1826_v35, %v1422_v36 }
 0x691   : > { %v1425_v16 = vmax.f32 %v1423_v37, 0.0 }
 0x693   : > { %1678 = vmatmul.msk.f32.vlgmr.msrb.gmra.mxu0 %vm1441_vm14, %v1425_v16 }
 0x710   : > { %v1462_v38 = vpop.f32.mrf.mxu0 }
 0x711   : > { %v1463_v39 = vadd.f32 %v1827_v10, %v1462_v38 }
 0x713   : > { %v1465_v40 = vsel %vm536_vm1, %v1463_v39, 0.0 }
 0x714   : > { %1466 = vadd.xlane.f32.xlu1 %v1465_v40 }
 0x787   : > { %v1467_v3 = vpop.xlane.xlu1 %1466 }
 0x788   : > { %v1468_v41 = vmul.f32 %v1467_v3, %v2587_v56 }
 0x78a   : > { %v1469_v42 = vsub.f32 %v1463_v39, %v1468_v41 }
 0x78c   : > { %v1470_v25 = vmul.f32 %v1469_v42, %v1469_v42 }
 0x78e   : > { %v1471_v43 = vsel %vm536_vm1, %v1470_v25, 0.0 }
 0x78f   : > { %1472 = vadd.xlane.f32.xlu1 %v1471_v43 }
 0x802   : > { %v1473_v24 = vpop.xlane.xlu1 %1472 }
 0x803   : > { %v1474_v44 = vmul.f32 %v1473_v24, %v2587_v56 }
 0x805   : > { %v1475_v17 = vadd.f32 1e-05, %v1474_v44 }
 0x807   : > { %1848 = vrsqrt.f32 %v1475_v17  ;;  %vm1482_vm0 = vweird.f32 %v1475_v17 }
 0x80d   : > { %v1849_v20 = vpop.eup %1848 }
 0x80e   : > { %v1477_v45 = vmul.f32 %v1849_v20, %v1475_v17  ;;  %vm1483_vm15 = vweird.f32 %v1849_v20 }
 0x80f   : > { %vm1484_vm2 = vmor %vm1482_vm0, %vm1483_vm15 }
 0x810   : > { %v1478_v5 = vmul.f32 %v1849_v20, %v1477_v45 }
 0x812   : > { %v1479_v46 = vmul.f32 0.5, %v1478_v5 }
 0x814   : > { %v1480_v11 = vsub.f32 1.5, %v1479_v46 }
 0x816   : > { %v1481_v19 = vmul.f32 %v1849_v20, %v1480_v11 }
 0x818   : > { %v1485_v47 = vsel %vm1484_vm2, %v1849_v20, %v1481_v19 }
 0x819   : > { %v1486_v48 = vmul.f32 %v1485_v47, %v1469_v42 }
 0x81b   : > { %v1487_v49 = vmul.f32 %v1824_v26, %v1486_v48 }
 0x81d   : > { %v1488_v50 = vadd.f32 %v1825_v29, %v1487_v49 }
 0x81f   : > { %v1489_v51 = vmul.f32 0.70710677, %v1488_v50 }
 0x821   : > { %1490 = vst.msk [vmem:[%s2315_s11] sm:$0xff] %vm536_vm1, %v1489_v51 }
 0x822   : > { %1997 = shalt.err (!%p1994_p13)
}
 0x823   : > { %1704 = dma.vmem_to_hbm [thread:$0]  (%p2250_p0), %s1505_s12, 128, %s1507_s9, %s1492_s18  }
 0x824 PF: > { %s2734_s25 = sld [smem:[#allocation16_spill]]  ;;  %p1729_p2 = scmp.ge.s32.totalorder %s2080_s28, 2 }
 0x826   : > { %p1721_p4 = pnand %p1729_p2, %p2257_p6 }
 0x828   : > { %p1722_p5 = pneg %p1721_p4 }
 0x82a   : > { %s1518_s20 = sand.u32 1, %s2734_s25  }
 0x82b   : > { %s1519_s29 = scalar_lea.sflag [#allocation4], %s1518_s20 }
 0x82c   : > { %2047 = dma.done.wait (%p1722_p5), %s1519_s29, 128  }
 0x82d   : > { %2049 = vsyncadd (%p1722_p5), %s1519_s29, 4294967168  ;;  %s32_s28 = sadd.s32 1, %s2080_s28   ;;  %s2736_s19 = sld [smem:[#allocation17_spill]] }
 0x82e   : > { %p29_p7 = scmp.ge.s32.totalorder %s32_s28, 6   ;;  %s2737_s23 = sld [smem:[#allocation24_spill]] }
 0x82f   : > { %s2738_s24 = sld [smem:[#allocation19_spill]]  ;;  %s2741_s21 = smov %s2056_s22 }
 0x830   : > { %s2739_s26 = sld [smem:[#allocation20_spill]]  ;;  %s2743_s25 = smov %s2076_s27 }
 0x831   : > { %s2740_s13 = sld [smem:[#allocation21_spill]] }
 0x833   : > { %s2742_s22 = smov %s2736_s19  ;;  %31 = sbr.rel (!%p29_p7) target bundleno = 18 (0x12), region = 148 }
 0x837   : > { %s2744_s27 = smov %s2740_s13 }
 0x838   :  { %1525 = vsyncpa [#allocation3], 1 }
 0x839   :  { %1527 = vsyncpa [#allocation3 + $0x1], 1 }
 0x83a   :  { %1528 = vsyncpa [#allocation6], 1 }
 0x83b   :  { %1530 = vsyncpa [#allocation6 + $0x1], 1 }
 0x83c   :  { %1531 = vsyncpa [#allocation9], 1 }
 0x83d   :  { %1532 = vsyncpa [#allocation4], 1 }
 0x83e   :  { %1534 = vsyncpa [#allocation4 + $0x1], 1 }

// kernel: tpu_custom_call.1
= control target key start
LH: loop header
LB: loop body
LE: loop exit
PB: predicated region body
PF: predicated region fallthrough
CT: control target
= control target key end

     0   :  { %s2019_s0 = inlined_call_operand.hbm [shape: f32[2,8,32], index: 0, kind: input, shape index: {}]   ;;  %s2020_s1 = inlined_call_operand.hbm [shape: s8[4,2,8,8], index: 1, kind: input, shape index: {}]   ;;  %s2021_s2 = inlined_call_operand.vmem [shape: f32[2,32,96], index: 2, kind: input, shape index: {}]   ;;  %s2022_s3 = inlined_call_operand.vmem [shape: f32[2,1,96], index: 3, kind: input, shape index: {}]   ;;  %s2023_s4 = inlined_call_operand.vmem [shape: f32[2,32,32], index: 4, kind: input, shape index: {}]   ;;  %s2024_s5 = inlined_call_operand.hbm [shape: f32[2,1,32], index: 5, kind: input, shape index: {}]   ;;  %s2025_s6 = inlined_call_operand.vmem [shape: f32[2,32,64], index: 6, kind: input, shape index: {}]   ;;  %s2026_s7 = inlined_call_operand.vmem [shape: f32[2,1,64], index: 7, kind: input, shape index: {}]   ;;  %s2027_s8 = inlined_call_operand.vmem [shape: f32[2,64,32], index: 8, kind: input, shape index: {}]   ;;  %s2028_s9 = inlined_call_operand.vmem [shape: f32[2,1,32], index: 9, kind: input, shape index: {}]   ;;  %s2029_s10 = inlined_call_operand.vmem [shape: f32[2,1,32], index: 10, kind: input, shape index: {}]   ;;  %s2030_s11 = inlined_call_operand.hbm [shape: f32[2,1,32], index: 11, kind: input, shape index: {}]   ;;  %s2031_s12 = inlined_call_operand.hbm [shape: f32[2,8,32], index: 12, kind: output, shape index: {}]  }
   0x1   :  { %2040 = sst [smem:[#allocation25_spill]] %s2019_s0 }
   0x2   :  { %2041 = sst [smem:[#allocation26_spill]] %s2024_s5 }
   0x3   :  { %2042 = sst [smem:[#allocation27_spill]] %s2025_s6 }
   0x4   :  { %2043 = sst [smem:[#allocation28_spill]] %s2027_s8 }
   0x5   :  { %2044 = sst [smem:[#allocation29_spill]] %s2028_s9 }
   0x6   :  { %2045 = sst [smem:[#allocation30_spill]] %s2030_s11 }
   0x7   :  { %2046 = sst [smem:[#allocation31_spill]] %s2031_s12 }
   0x8   :  { %17 = vsyncpa [#allocation3], 0 }
   0x9   :  { %19 = vsyncpa [#allocation3 + $0x1], 0 }
   0xa   :  { %20 = vsyncpa [#allocation6], 0 }
   0xb   :  { %22 = vsyncpa [#allocation6 + $0x1], 0 }
   0xc   :  { %23 = vsyncpa [#allocation9], 0 }
   0xd   :  { %24 = vsyncpa [#allocation4], 0 }
   0xe   :  { %26 = vsyncpa [#allocation4 + $0x1], 0  ;;  %s1700_s21 = smov 0   ;;  %s1702_s22 = smov 0  }
   0xf   :  { %s1704_s23 = smov 0   ;;  %s1706_s24 = smov 0  }
  0x10   :  { %s1708_s25 = smov 0   ;;  %s1710_s26 = smov 0  }
  0x11   :  { %s1712_s27 = smov 0   ;;  %s1714_s28 = smov 0  }
  0x12 LB: > { %2047 = sst [smem:[#allocation16_spill]] %s1589_s21  ;;  %s1741_s29 = sadd.s32 4294967295, %s1617_s28   ;;  %s1617_s28 = sphi %s1714_s28, %s32_s28   ;;  %s1613_s27 = sphi %s1712_s27, %s2081_s27   ;;  %s1609_s26 = sphi %s1710_s26, %s2076_s26   ;;  %s1605_s25 = sphi %s1708_s25, %s2080_s25   ;;  %s1601_s24 = sphi %s1706_s24, %s2075_s24   ;;  %s1597_s23 = sphi %s1704_s23, %s2074_s23   ;;  %s1593_s22 = sphi %s1702_s22, %s2079_s22   ;;  %s1589_s21 = sphi %s1700_s21, %s2078_s21  }
  0x13   : > { %2048 = sst [smem:[#allocation17_spill]] %s1597_s23  ;;  %p1190_p0 = scmp.ge.s32.totalorder %s1617_s28, 1 }
  0x14   : > { %2049 = sst [smem:[#allocation18_spill]] %s1605_s25  ;;  %p65_p1 = scmp.eq.s32.totalorder %s1741_s29, 0 }
  0x15   : > { %2050 = sst [smem:[#allocation19_spill]] %s1609_s26  ;;  %p337_p2 = scmp.lt.s32.totalorder %s1617_s28, 5 }
  0x16   : > { %s2051_s5 = sld [smem:[#allocation26_spill]]  ;;  %s1619_s16 = smov [#allocation7]  }
  0x17   : > { %p1749_p3 = pnand %p1190_p0, %p337_p2  ;;  %s359_s17 = sshll.u32 %s1619_s16, 4  ;;  %s360_s17 = int_to_ptr.vmem [resolvable:$true] %s359_s17 }
  0x18   : > { %s2053_s11 = sld [smem:[#allocation30_spill]]  ;;  %s1620_s30 = smov 16  }
  0x19   : > { %p1250_p4 = pneg %p1749_p3  ;;  %s1621_s13 = smov 1  }
  0x1a   : > { %s1622_s16 = smov [#allocation8]   ;;  %s1189_s12 = sadd.s32 4294967294, %s1617_s28  }
  0x1b   : > { %p1251_p5 = pnand %p1250_p4, %p65_p1  ;;  %s41_s25 = sadd.s32 1, %s1609_s26 }
  0x1c   : > { %s357_s14 = sshll.u32 %s2051_s5, 4  ;;  %s388_s5 = sshll.u32 %s1622_s16, 4  ;;  %s358_s14 = int_to_ptr.hbm [resolvable:$true] %s357_s14  ;;  %s389_s5 = int_to_ptr.vmem [resolvable:$true] %s388_s5 }
  0x1d   : > { %1253 = dma.hbm_to_vmem [thread:$0]  (!%p1251_p5), %s358_s14, 32, %s360_s17, [#allocation6], %s1620_s30, %s1620_s30, %s1621_s13  }
  0x1e   : > { %s386_s20 = sshll.u32 %s2053_s11, 4  ;;  %p42_p6 = scmp.ge.s32.totalorder %s41_s25, 2  ;;  %s387_s20 = int_to_ptr.hbm [resolvable:$true] %s386_s20 }
  0x1f   : > { %1256 = dma.hbm_to_vmem [thread:$0]  (!%p1251_p5), %s387_s20, 32, %s389_s5, [#allocation9], %s1620_s30, %s1620_s30, %s1621_s13  }
  0x20   : > { %s44_s18 = sadd.s32 1, %s1613_s27  ;;  %s51_s19 = sadd.s32 1, %s1597_s23 }
  0x21   : > { %p58_p7 = scmp.ne.s32.totalorder %s1597_s23, %s1593_s22  ;;  %s2083_s25 = smov (%p42_p6, %s41_s25), 0 }
  0x22   : > { %2054 = sst [smem:[#allocation20_spill]] %s2083_s25  ;;  %s2085_s18 = smov (!%p42_p6, %s44_s18), %s1613_s27 }
  0x23   : > { %p59_p8 = scmp.eq.s32.totalorder %s1617_s28, 0  ;;  %p64_p9 = scmp.ne.s32.totalorder %s1593_s22, %s1589_s21 }
  0x24   : > { %p46_p10 = scmp.ge.s32.totalorder %s2085_s18, 2  ;;  %p324_p11 = scmp.eq.s32.totalorder %s1741_s29, 3 }
  0x25   : > { %p1773_p12 = por %p59_p8, %p58_p7  ;;  %p1779_p13 = por %p65_p1, %p64_p9 }
  0x26   : > { %s2087_s18 = smov (%p46_p10, %s2085_s18), 0  ;;  %p1785_p0 = por %p324_p11, %p58_p7 }
  0x27   : > { %2057 = sst [smem:[#allocation21_spill]] %s2087_s18  ;;  %p330_p2 = scmp.eq.s32.totalorder %s1189_s12, 3 }
  0x28   : > { %s2058_s17 = scalar_select %p1785_p0, 1, 0 }
  0x29   : > { %s48_s20 = ssub.s32 %s1613_s27, %s2087_s18  ;;  %p1270_p4 = scmp.lt.s32.totalorder %s1617_s28, 4 }
  0x2a   : > { %2059 = sst [smem:[#allocation22_spill]] %s2058_s17  ;;  %p49_p5 = scmp.eq.s32.totalorder %s48_s20, 0 }
  0x2b   : > { %p1792_p6 = por %p330_p2, %p64_p9  ;;  %s402_s13 = sand.u32 1, %s1597_s23  }
  0x2c   : > { %s1195_s16 = sshll.u32 %s1613_s27, 3  ;;  %s1194_s25 = sshll.u32 %s402_s13, 3 }
  0x2d   : > { %s2060_s30 = scalar_select %p1792_p6, 1, 0 }
  0x2e   : > { %s1799_s11 = scalar_select %p49_p5, %s1597_s23, %s51_s19  }
  0x2f   : > { %2061 = sst [smem:[#allocation23_spill]] %s2060_s30  ;;  %s406_s12 = scalar_lea.vmem [#allocation2], %s1194_s25 }
  0x30   : > { %2062 = sst [smem:[#allocation24_spill]] %s1799_s11  ;;  %s414_s18 = sshll.u32 %s406_s12, 4  ;;  %s415_s18 = int_to_ptr.vmem [resolvable:$true] %s414_s18 }
  0x31   : > { %s2063_s0 = sld [smem:[#allocation25_spill]]  ;;  %p1808_p7 = pnand %p1270_p4, %p1773_p12 }
  0x32   : > { %s425_s19 = scalar_lea.vmem [#allocation5], %s1194_s25  ;;  %s421_s23 = sand.u32 1, %s1617_s28  }
  0x33   : > { %s432_s11 = sshll.u32 %s425_s19, 4  ;;  %s403_s30 = scalar_lea.sflag [#allocation3], %s402_s13  ;;  %s433_s11 = int_to_ptr.vmem [resolvable:$true] %s432_s11 }
  0x34   : > { %s1197_s21 = sshll.u32 %s1613_s27, 1  ;;  %s422_s12 = scalar_lea.sflag [#allocation6], %s421_s23 }
  0x35   : > { %s1624_s8 = smov 32   ;;  %s1625_s6 = smov 2  }
  0x36   : > { %s1824_s25 = sand.u32 (!%p1749_p3), 1, %s1593_s22  }
  0x37   : > { %s410_s17 = scalar_lea.hbm %s2063_s0, %s1195_s16  ;;  %s429_s16 = scalar_lea.hbm %s2020_s1, %s1197_s21 }
  0x38   : > { %s412_s9 = sshll.u32 %s410_s17, 4  ;;  %s430_s5 = sshll.u32 %s429_s16, 4  ;;  %s413_s9 = int_to_ptr.hbm [resolvable:$true] %s412_s9  ;;  %s431_s5 = int_to_ptr.hbm [resolvable:$true] %s430_s5 }
  0x39   : > { %1260 = dma.hbm_to_vmem [thread:$0]  (!%p1808_p7), %s413_s9, 128, %s415_s18, %s403_s30  }
  0x3a   : > { %s1623_s0 = smov 64   ;;  %444 = sbr.rel (%p1749_p3) target bundleno = 2055 (0x807), region = 68 }
  0x3b   : > { %1263 = dma.hbm_to_vmem [thread:$0]  (!%p1808_p7), %s431_s5, 128, %s433_s11, %s422_s12, %s1623_s0, %s1624_s8, %s1625_s6  }
  0x3c   : > { %s1827_s9 = sshll.u32 (!%p1749_p3), %s1824_s25, 3  ;;  %s447_s18 = scalar_lea.sflag (!%p1749_p3), [#allocation3], %s1824_s25 }
  0x3d   : > { %s450_s30 = scalar_lea.vmem (!%p1749_p3), [#allocation2], %s1827_s9 }
  0x3f   : > { %1568 = dma.done.wait (%p1779_p13), %s447_s18, 128  }
  0x40   : > { %1570 = vsyncadd (%p1779_p13), %s447_s18, 4294967168  ;;  %s456_s0 = sand.u32 1, %s1741_s29   ;;  %s460_s8 = scalar_lea.vmem [#allocation5], %s1827_s9 }
  0x41   : > { %s457_s6 = scalar_lea.sflag [#allocation6], %s456_s0 }
  0x42   : > { %1572 = dma.done.wait (%p1779_p13), %s457_s6, 128  }
  0x43   : > { %1574 = vsyncadd (%p1779_p13), %s457_s6, 4294967168 }
  0x44   : > { %1576 = dma.done.wait (%p65_p1), [#allocation6], 32  }
  0x45   : > { %1578 = vsyncadd (%p65_p1), [#allocation6], 4294967264 }
  0x46   : > { %1580 = dma.done.wait (%p65_p1), [#allocation9], 32  }
  0x47   : > { %1582 = vsyncadd (%p65_p1), [#allocation9], 4294967264  ;;  %s1850_s11 = scalar_lea.vmem [#allocation10], %s1827_s9  ;;  %p1204_p3 = scmp.ne.s32.totalorder %s1601_s24, 0 }
  0x49   : > { %520 = sbr.rel (%p1204_p3) target bundleno = 80 (0x50), region = 88 }
  0x4e   : > { %v521_v0 = vld [vmem:[%s450_s30] sm:$0xff]  ;;  %vm522_vm0 = vcmask 261120  }
  0x4f   : > { %523 = vst.msk [vmem:[%s1850_s11] sm:$0xff] %vm522_vm0, %v521_v0 }
  0x50 PF: > { %s1855_s23 = sshll.u32 %s1601_s24, 5  ;;  %s531_s29 = scalar_lea.vmem %s2022_s3, %s1601_s24  ;;  %vm536_vm1 = vcmask 261120   ;;  %vm570_vm2 = vcmask 64512   ;;  %v1235_v17 = vld [vmem:[%s460_s8] sm:$0xff]   ;;  %vm858_vm7 = vcmask 130048   ;;  %vm860_vm8 = vcmask 195584  }
  0x51   : > { %s526_s19 = scalar_lea.vmem %s2021_s2, %s1855_s23  ;;  %v1359_v6 = vld [vmem:[%s531_s29] ss:$0 sm:$0xff]  ;;  %s1626_s21 = smov 104   ;;  %v1233_v18 = vunpack.c.2.s8 %v1235_v17  ;;  %v1229_v20 = vunpack.c.0.s8 %v1235_v17  ;;  %v1234_v25 = vunpack.c.3.s8 %v1235_v17  ;;  %v1230_v30 = vunpack.c.1.s8 %v1235_v17 }
  0x52   : > { %v530_v1 = vld [vmem:[%s526_s19 + $0x18] sm:$0xff]  ;;  %v529_v2 = vld [vmem:[%s526_s19 + $0x10] sm:$0xff]  ;;  %v528_v3 = vld [vmem:[%s526_s19 + $0x8] sm:$0xff]  ;;  %s1627_s26 = smov 120   ;;  %s1628_s17 = smov 112   ;;  %vm985_vm13 = vcmask 523264  }
  0x53   : > { %552 = vmatpush.msra.mxu0 %v530_v1  ;;  %v527_v4 = vld [vmem:[%s526_s19] sm:$0xff]  ;;  %s1629_s16 = smov 96   ;;  %v687_v19 = vcvt.s32.f32 %v1233_v18  ;;  %v685_v24 = vcvt.s32.f32 %v1229_v20  ;;  %v688_v29 = vcvt.s32.f32 %v1234_v25  ;;  %v686_v35 = vcvt.s32.f32 %v1230_v30  ;;  %s1630_s5 = smov 64  }
  0x54   : > { %s1631_s12 = smov 16   ;;  %s867_s9 = scalar_lea.vmem [#allocation7], %s1601_s24 }
  0x55   : > { %553 = vmatpush.msra.mxu0 %v529_v2  ;;  %vm691_vm3 = vcmp.eq.f32.partialorder %v687_v19, 0.0  ;;  %vm689_vm4 = vcmp.eq.f32.partialorder %v685_v24, 0.0  ;;  %vm692_vm5 = vcmp.eq.f32.partialorder %v688_v29, 0.0  ;;  %vm690_vm6 = vcmp.eq.f32.partialorder %v686_v35, 0.0  ;;  %s1632_s18 = smov 8   ;;  %s1633_s30 = smov 24  }
  0x56   : > { %v524_v5 = vld [vmem:[%s1850_s11] sm:$0xff]  ;;  %s862_s8 = scalar_lea.vmem %s2023_s4, %s1855_s23  ;;  %v1360_v30 = vld [vmem:[%s867_s9] ss:$0 sm:$0xff]  ;;  %s895_s29 = scalar_lea.vmem %s2029_s10, %s1601_s24 }
  0x57   : > { %554 = vmatpush.msra.mxu0 %v528_v3  ;;  %v866_v19 = vld [vmem:[%s862_s8 + $0x18] sm:$0xff]  ;;  %v865_v20 = vld [vmem:[%s862_s8 + $0x10] sm:$0xff]  ;;  %s897_s13 = scalar_lea.vmem [#allocation8], %s1601_s24  ;;  %s2067_s14 = sld [smem:[#allocation29_spill]] }
  0x59   : > { %555 = vmatpush.msra.mxu0 %v527_v4 }
  0x5a   : > { %1206 = vmatmul.msk.f32.vlgmr.msra.gmra.mxu0 %vm536_vm1, %v524_v5 }
  0x5d   : > { %s980_s20 = scalar_lea.vmem %s2067_s14, %s1601_s24 }
  0xd7   : > { %v557_v7 = vpop.f32.mrf.mxu0 }
  0xd8   : > { %v558_v8 = vadd.f32 %v1359_v6, %v557_v7 }
  0xda   : > { %v1867_v9 = vmax.f32 %v558_v8, 0.0 }
  0xdc   : > { %566 = vrot.lane.b32.xlu1 %v1867_v9, %s1626_s21  ;;  %562 = vrot.lane.b32.xlu0 %v1867_v9, %s1627_s26  ;;  %s941_s21 = scalar_lea.vmem %s2026_s7, %s1601_s24 }
  0xe4   : > { %564 = vrot.lane.b32.xlu0 %v1867_v9, %s1628_s17 }
 0x14e   : > { %v1872_v10 = vpop.permute.xlu1 %566  ;;  %v1874_v11 = vpop.permute.xlu0 %562 }
 0x14f   : > { %647 = vrot.lane.b32.xlu0 %v1872_v10, %s1629_s16  ;;  %595 = vrot.lane.b32.xlu1 %v1874_v11, %s1629_s16 }
 0x156   : > { %v1878_v12 = vpop.permute.xlu0 %564 }
 0x157   : > { %621 = vrot.lane.b32.xlu2 %v1878_v12, %s1629_s16  ;;  %v1354_v62 = vpack.i.bf16 %v1878_v12, %v1874_v11 }
 0x15f   : > { %568 = vrot.lane.b32.xlu2 %v1867_v9, %s1629_s16  ;;  %s2065_s16 = sld [smem:[#allocation27_spill]] }
 0x1b1   : > { %v622_v13 = vpop.permute.xlu2 %621 }
 0x1b2   : > { %1211 = vmatpush.xpose.msk.msra.mxu3 %vm570_vm2, %v622_v13 }
 0x1b5   : > { %1212 = vmatmul.msk.f32.vlgmr.msra.gmra.mxu3 %vm570_vm2, %v1878_v12 }
 0x1b9   : > { %v569_v14 = vpop.permute.xlu2 %568 }
 0x1ba   : > { %1207 = vmatpush.xpose.msk.msra.mxu1 %vm570_vm2, %v569_v14 }
 0x1bd   : > { %1208 = vmatmul.msk.f32.vlgmr.msra.gmra.mxu1 %vm570_vm2, %v1867_v9 }
 0x1c1   : > { %v596_v15 = vpop.permute.xlu1 %595  ;;  %v648_v16 = vpop.permute.xlu0 %647 }
 0x1c2   : > { %1209 = vmatpush.xpose.msk.msra.mxu2 %vm570_vm2, %v596_v15  ;;  %1213 = vmatpush.xpose.msk.msrb.mxu1 %vm570_vm2, %v648_v16 }
 0x1c5   : > { %1210 = vmatmul.msk.f32.vlgmr.msra.gmra.mxu2 %vm570_vm2, %v1874_v11  ;;  %1214 = vmatmul.msk.f32.vlgmr.msrb.gmra.mxu1 %vm570_vm2, %v1872_v10 }
 0x238   : > { %v644_v21 = vpop.f32.mrf.mxu3 }
 0x239   : > { %v675_v22 = vmul.f32 0.17677669, %v644_v21  ;;  %v864_v21 = vld [vmem:[%s862_s8 + $0x8] sm:$0xff] }
 0x23a   : > { %v592_v23 = vpop.f32.mrf.mxu1 }
 0x23b   : > { %v695_v26 = vsel %vm691_vm3, -1e+09, %v675_v22  ;;  %v673_v28 = vmul.f32 0.17677669, %v592_v23  ;;  %v863_v22 = vld [vmem:[%s862_s8] sm:$0xff] }
 0x23c   : > { %v703_v27 = vsel %vm570_vm2, %v695_v26, -inf }
 0x23d   : > { %704 = vmax.xlane.f32.xlu2 %v703_v27  ;;  %v693_v31 = vsel %vm689_vm4, -1e+09, %v673_v28 }
 0x23e   : > { %v697_v34 = vsel %vm570_vm2, %v693_v31, -inf }
 0x242   : > { %v670_v32 = vpop.f32.mrf.mxu1 }
 0x243   : > { %v676_v33 = vmul.f32 0.17677669, %v670_v32 }
 0x245   : > { %698 = vmax.xlane.f32.xlu2 %v697_v34  ;;  %v696_v36 = vsel %vm692_vm5, -1e+09, %v676_v33  ;;  %v1634_v34 = vmov 32.0  }
 0x246   : > { %v706_v37 = vsel %vm570_vm2, %v696_v36, -inf }
 0x247   : > { %707 = vmax.xlane.f32.xlu0 %v706_v37 }
 0x248   : > { %v618_v38 = vpop.f32.mrf.mxu2 }
 0x249   : > { %v674_v39 = vmul.f32 0.17677669, %v618_v38 }
 0x24b   : > { %v694_v40 = vsel %vm690_vm6, -1e+09, %v674_v39 }
 0x24c   : > { %v700_v41 = vsel %vm570_vm2, %v694_v40, -inf }
 0x24d   : > { %701 = vmax.xlane.f32.xlu1 %v700_v41 }
 0x2b0   : > { %v705_v42 = vpop.xlane.xlu2 %704 }
 0x2b1   : > { %v711_v43 = vsub.f32 %v695_v26, %v705_v42 }
 0x2b3   : > { %v717_v44 = vmul.f32 1.442695, %v711_v43 }
 0x2b5   : > { %1365 = vpow2.f32 %v717_v44 }
 0x2b8   : > { %v699_v45 = vpop.xlane.xlu2 %698 }
 0x2b9   : > { %v709_v49 = vsub.f32 %v693_v31, %v699_v45 }
 0x2ba   : > { %v708_v46 = vpop.xlane.xlu0 %707 }
 0x2bb   : > { %v1366_v47 = vpop.eup %1365  ;;  %v712_v48 = vsub.f32 %v696_v36, %v708_v46  ;;  %v713_v52 = vmul.f32 1.442695, %v709_v49 }
 0x2bc   : > { %v727_v50 = vsel %vm570_vm2, %v1366_v47, 0.0 }
 0x2bd   : > { %v719_v51 = vmul.f32 1.442695, %v712_v48  ;;  %728 = vadd.xlane.f32.xlu2 %v727_v50 }
 0x2bf   : > { %1367 = vpow2.f32 %v719_v51 }
 0x2c0   : > { %v702_v53 = vpop.xlane.xlu1 %701  ;;  %1369 = vpow2.f32 %v713_v52 }
 0x2c1   : > { %v710_v54 = vsub.f32 %v694_v40, %v702_v53 }
 0x2c3   : > { %v715_v55 = vmul.f32 1.442695, %v710_v54 }
 0x2c5   : > { %v1368_v56 = vpop.eup %1367  ;;  %1371 = vpow2.f32 %v715_v55 }
 0x2c6   : > { %v730_v57 = vsel %vm570_vm2, %v1368_v56, 0.0  ;;  %v1370_v58 = vpop.eup %1369 }
 0x2c7   : > { %731 = vadd.xlane.f32.xlu0 %v730_v57  ;;  %v721_v61 = vsel %vm570_vm2, %v1370_v58, 0.0 }
 0x2cb   : > { %v1372_v59 = vpop.eup %1371 }
 0x2cc   : > { %v724_v60 = vsel %vm570_vm2, %v1372_v59, 0.0 }
 0x2cd   : > { %725 = vadd.xlane.f32.xlu1 %v724_v60 }
 0x2cf   : > { %722 = vadd.xlane.f32.xlu0 %v721_v61 }
 0x2d5   : > { %819 = vrot.lane.b32.xlu2 %v1872_v10, %s1630_s5 }
 0x2e3   : > { %741 = vrot.lane.b32.xlu0 %v1867_v9, %s1630_s5 }
 0x2e6   : > { %1355 = vrot.lane.b32.xlu1 %v1354_v62, %s1630_s5  ;;  %s936_s5 = scalar_lea.vmem %s2065_s16, %s1855_s23  ;;  %s2070_s16 = sld [smem:[#allocation31_spill]] }
 0x2e7   : > { %v940_v46 = vld [vmem:[%s936_s5 + $0x18] sm:$0xff]  ;;  %v938_v48 = vld [vmem:[%s936_s5 + $0x8] sm:$0xff]  ;;  %v937_v49 = vld [vmem:[%s936_s5] sm:$0xff] }
 0x2ec   : > { %s1527_s8 = scalar_lea.hbm %s2070_s16, 16 }
 0x330   : > { %v729_v1 = vpop.xlane.xlu2 %728 }
 0x338   : > { %v820_v13 = vpop.permute.xlu2 %819 }
 0x33a   : > { %v732_v63 = vpop.xlane.xlu0 %731 }
 0x340   : > { %v726_v2 = vpop.xlane.xlu1 %725 }
 0x342   : > { %v723_v0 = vpop.xlane.xlu0 %722 }
 0x343   : > { %1373 = vrcp.f32 %v723_v0  ;;  %v1361_v0 = vld [vmem:[%s895_s29] ss:$0 sm:$0xff] }
 0x344   : > { %1375 = vrcp.f32 %v729_v1 }
 0x345   : > { %1377 = vrcp.f32 %v726_v2 }
 0x346   : > { %1379 = vrcp.f32 %v732_v63 }
 0x347   : > { %1381 = vrcp.f32 %v1634_v34 }
 0x349   : > { %v1374_v3 = vpop.eup %1373 }
 0x34a   : > { %v737_v5 = vmul.f32 %v1374_v3, %v1370_v58  ;;  %v1376_v6 = vpop.eup %1375  ;;  %v1362_v3 = vld [vmem:[%s897_s13] ss:$0 sm:$0xff]  ;;  %s2068_s13 = sld [smem:[#allocation18_spill]] }
 0x34b   : > { %v1378_v7 = vpop.eup %1377  ;;  %v739_v11 = vmul.f32 %v1376_v6, %v1366_v47  ;;  %v939_v47 = vld [vmem:[%s936_s5 + $0x10] sm:$0xff] }
 0x34c   : > { %v738_v12 = vmul.f32 %v1378_v7, %v1372_v59  ;;  %v1380_v14 = vpop.eup %1379 }
 0x34d   : > { %v740_v15 = vmul.f32 %v1380_v14, %v1368_v56  ;;  %v1382_v35 = vpop.eup %1381 }
 0x34e   : > { %v903_v36 = vmul.f32 32.0, %v1382_v35  ;;  %vm907_vm9 = vweird.f32 %v1382_v35 }
 0x350   : > { %v904_v37 = vsub.f32 1.0, %v903_v36 }
 0x352   : > { %v905_v38 = vmul.f32 %v1382_v35, %v904_v37 }
 0x354   : > { %v906_v39 = vadd.f32 %v1382_v35, %v905_v38 }
 0x355   : > { %v742_v4 = vpop.permute.xlu0 %741 }
 0x356   : > { %762 = vmatpush.msrb.mxu2 %v742_v4  ;;  %v1924_v40 = vsel %vm907_vm9, %v1382_v35, %v906_v39 }
 0x357   : > { %1215 = vmatmul.msk.f32.vlgmr.msrb.gmra.mxu2 %vm570_vm2, %v737_v5 }
 0x358   : > { %v1356_v8 = vpop.permute.xlu1 %1355  ;;  %887 = vmatpush.msra.mxu2 %v866_v19 }
 0x359   : > { %v1358_v9 = vunpack.i.h.bf16 %v1356_v8  ;;  %v1357_v10 = vunpack.i.l.bf16 %v1356_v8 }
 0x35a   : > { %888 = vmatpush.msra.mxu2 %v865_v20 }
 0x35b   : > { %788 = vmatpush.msrb.mxu3 %v1357_v10  ;;  %814 = vmatpush.msra.mxu1 %v1358_v9  ;;  %v1363_v9 = vld [vmem:[%s941_s21] ss:$0 sm:$0xff] }
 0x35c   : > { %1216 = vmatmul.msk.f32.vlgmr.msrb.gmra.mxu3 %vm570_vm2, %v738_v12  ;;  %1217 = vmatmul.msk.f32.vlgmr.msra.gmra.mxu1 %vm570_vm2, %v739_v11 }
 0x35d   : > { %840 = vmatpush.msrb.mxu1 %v820_v13  ;;  %889 = vmatpush.msra.mxu2 %v864_v21  ;;  %v1364_v13 = vld [vmem:[%s980_s20] ss:$0 sm:$0xff] }
 0x35e   : > { %961 = vmatpush.msra.mxu3 %v940_v46 }
 0x35f   : > { %890 = vmatpush.msra.mxu2 %v863_v22 }
 0x360   : > { %962 = vmatpush.msra.mxu3 %v939_v47 }
 0x362   : > { %963 = vmatpush.msra.mxu3 %v938_v48 }
 0x364   : > { %1218 = vmatmul.msk.f32.vlgmr.msrb.gmra.mxu1 %vm570_vm2, %v740_v15  ;;  %964 = vmatpush.msra.mxu3 %v937_v49 }
 0x3d9   : > { %v816_v16 = vpop.f32.mrf.mxu1 }
 0x3da   : > { %850 = vrot.lane.b32.xlu2 %v816_v16, %s1631_s12  ;;  %v764_v24 = vpop.f32.mrf.mxu2  ;;  %s1221_s12 = sshll.u32 %s1601_s24, 6  ;;  %s1224_s24 = sshll.u32 %s2068_s13, 3 }
 0x3db   : > { %s1046_s5 = scalar_lea.hbm %s2070_s16, %s1224_s24 }
 0x3dc   : > { %s1050_s9 = sshll.u32 %s1046_s5, 4  ;;  %s1051_s9 = int_to_ptr.hbm [resolvable:$true] %s1050_s9 }
 0x3df   : > { %v790_v17 = vpop.f32.mrf.mxu3 }
 0x3e0   : > { %846 = vrot.lane.b32.xlu1 %v790_v17, %s1632_s18  ;;  %s1036_s18 = scalar_lea.sflag [#allocation4], %s1824_s25 }
 0x3e1   : > { %v842_v18 = vpop.f32.mrf.mxu1 }
 0x3e8   : > { %854 = vrot.lane.b32.xlu1 %v842_v18, %s1633_s30  ;;  %s2066_s30 = sld [smem:[#allocation28_spill]] }
 0x3ee   : > { %s1941_s0 = scalar_lea.vmem %s2066_s30, %s1221_s12  ;;  %s1048_s12 = sshll.u32 %s1850_s11, 4  ;;  %s1049_s12 = int_to_ptr.vmem [resolvable:$true] %s1048_s12 }
 0x3ef   : > { %v979_v50 = vld [vmem:[%s1941_s0 + $0x38] sm:$0xff]  ;;  %v978_v51 = vld [vmem:[%s1941_s0 + $0x30] sm:$0xff]  ;;  %v977_v52 = vld [vmem:[%s1941_s0 + $0x28] sm:$0xff]  ;;  %s1521_s30 = sshra.s32 %s1051_s9, 4  ;;  %s1522_s30 = int_to_ptr.hbm [resolvable:$true] %s1521_s30 }
 0x3f0   : > { %997 = vmatpush.msrb.mxu0 %v979_v50  ;;  %v976_v55 = vld [vmem:[%s1941_s0 + $0x20] sm:$0xff]  ;;  %v975_v57 = vld [vmem:[%s1941_s0 + $0x18] sm:$0xff]  ;;  %v974_v6 = vld [vmem:[%s1941_s0 + $0x10] sm:$0xff]  ;;  %p1528_p10 = scmp.lt.s32.totalorder %s1522_s30, %s2070_s16 }
 0x3f1   : > { %v973_v7 = vld [vmem:[%s1941_s0 + $0x8] sm:$0xff]  ;;  %v972_v8 = vld [vmem:[%s1941_s0] sm:$0xff]  ;;  %s1523_s0 = scalar_lea.hbm %s1522_s30, 8 }
 0x3f2   : > { %998 = vmatpush.msrb.mxu0 %v978_v51  ;;  %p1524_p1 = scmp.ne.s32.totalorder %s1522_s30, %s1523_s0  ;;  %p1529_p11 = scmp.lt.s32.totalorder %s1527_s8, %s1523_s0 }
 0x3f4   : > { %999 = vmatpush.msrb.mxu0 %v977_v52  ;;  %p1525_p8 = pnand %p1524_p1, %p1785_p0  ;;  %p1530_p12 = por %p1529_p11, %p1528_p10 }
 0x3f6   : > { %1000 = vmatpush.msrb.mxu0 %v976_v55  ;;  %p1526_p9 = pneg %p1525_p8 }
 0x3f8   : > { %1001 = vmatpush.msrb.mxu0 %v975_v57  ;;  %p1531_p13 = pnand %p1530_p12, %p1526_p9 }
 0x3fa   : > { %1002 = vmatpush.msrb.mxu0 %v974_v6 }
 0x3fc   : > { %1003 = vmatpush.msrb.mxu0 %v973_v7 }
 0x3fe   : > { %1004 = vmatpush.msrb.mxu0 %v972_v8 }
 0x434   : > { %v851_v26 = vpop.permute.xlu2 %850 }
 0x452   : > { %v847_v23 = vpop.permute.xlu1 %846 }
 0x453   : > { %v857_v25 = vsel %vm570_vm2, %v764_v24, %v847_v23 }
 0x454   : > { %v859_v28 = vsel %vm858_vm7, %v857_v25, %v851_v26 }
 0x45a   : > { %v855_v27 = vpop.permute.xlu1 %854 }
 0x45b   : > { %v861_v29 = vsel %vm860_vm8, %v859_v28, %v855_v27 }
 0x45c   : > { %1219 = vmatmul.msk.f32.vlgmr.msra.gmra.mxu2 %vm536_vm1, %v861_v29 }
 0x4df   : > { %v892_v31 = vpop.f32.mrf.mxu2 }
 0x4e0   : > { %v893_v32 = vadd.f32 %v1360_v30, %v892_v31 }
 0x4e2   : > { %v899_v33 = vsel %vm536_vm1, %v893_v32, 0.0 }
 0x4e3   : > { %900 = vadd.xlane.f32.xlu0 %v899_v33 }
 0x556   : > { %v901_v41 = vpop.xlane.xlu0 %900 }
 0x557   : > { %v909_v42 = vmul.f32 %v1924_v40, %v901_v41 }
 0x559   : > { %v910_v43 = vsub.f32 %v893_v32, %v909_v42 }
 0x55b   : > { %v911_v44 = vmul.f32 %v910_v43, %v910_v43 }
 0x55d   : > { %v912_v45 = vsel %vm536_vm1, %v911_v44, 0.0 }
 0x55e   : > { %913 = vadd.xlane.f32.xlu2 %v912_v45 }
 0x5d1   : > { %v914_v53 = vpop.xlane.xlu2 %913 }
 0x5d2   : > { %v915_v54 = vmul.f32 %v914_v53, %v1924_v40 }
 0x5d4   : > { %v916_v56 = vadd.f32 1e-05, %v915_v54 }
 0x5d6   : > { %1383 = vrsqrt.f32 %v916_v56  ;;  %vm923_vm11 = vweird.f32 %v916_v56 }
 0x5dc   : > { %v1384_v58 = vpop.eup %1383 }
 0x5dd   : > { %v918_v59 = vmul.f32 %v1384_v58, %v916_v56  ;;  %vm924_vm10 = vweird.f32 %v1384_v58 }
 0x5de   : > { %vm925_vm12 = vmor %vm923_vm11, %vm924_vm10 }
 0x5df   : > { %v919_v60 = vmul.f32 %v1384_v58, %v918_v59 }
 0x5e1   : > { %v920_v61 = vmul.f32 0.5, %v919_v60 }
 0x5e3   : > { %v921_v62 = vsub.f32 1.5, %v920_v61 }
 0x5e5   : > { %v922_v63 = vmul.f32 %v1384_v58, %v921_v62 }
 0x5e7   : > { %v926_v1 = vsel %vm925_vm12, %v1384_v58, %v922_v63 }
 0x5e8   : > { %v927_v2 = vmul.f32 %v926_v1, %v910_v43 }
 0x5ea   : > { %v931_v4 = vmul.f32 %v1361_v0, %v927_v2 }
 0x5ec   : > { %v935_v5 = vadd.f32 %v1362_v3, %v931_v4 }
 0x5ee   : > { %1220 = vmatmul.msk.f32.vlgmr.msra.gmra.mxu3 %vm536_vm1, %v935_v5 }
 0x671   : > { %v966_v10 = vpop.f32.mrf.mxu3 }
 0x672   : > { %v967_v11 = vadd.f32 %v1363_v9, %v966_v10 }
 0x674   : > { %v969_v12 = vmax.f32 %v967_v11, 0.0 }
 0x676   : > { %1222 = vmatmul.msk.f32.vlgmr.msrb.gmra.mxu0 %vm985_vm13, %v969_v12 }
 0x6f3   : > { %v1006_v14 = vpop.f32.mrf.mxu0 }
 0x6f4   : > { %v1007_v15 = vadd.f32 %v1364_v13, %v1006_v14 }
 0x6f6   : > { %v1009_v16 = vsel %vm536_vm1, %v1007_v15, 0.0 }
 0x6f7   : > { %1010 = vadd.xlane.f32.xlu1 %v1009_v16 }
 0x76a   : > { %v1011_v17 = vpop.xlane.xlu1 %1010 }
 0x76b   : > { %v1012_v18 = vmul.f32 %v1011_v17, %v1924_v40 }
 0x76d   : > { %v1013_v19 = vsub.f32 %v1007_v15, %v1012_v18 }
 0x76f   : > { %v1014_v20 = vmul.f32 %v1013_v19, %v1013_v19 }
 0x771   : > { %v1015_v21 = vsel %vm536_vm1, %v1014_v20, 0.0 }
 0x772   : > { %1016 = vadd.xlane.f32.xlu0 %v1015_v21 }
 0x7e5   : > { %v1017_v22 = vpop.xlane.xlu0 %1016 }
 0x7e6   : > { %v1018_v23 = vmul.f32 %v1017_v22, %v1924_v40 }
 0x7e8   : > { %v1019_v24 = vadd.f32 1e-05, %v1018_v23 }
 0x7ea   : > { %1385 = vrsqrt.f32 %v1019_v24  ;;  %vm1026_vm15 = vweird.f32 %v1019_v24 }
 0x7f0   : > { %v1386_v25 = vpop.eup %1385 }
 0x7f1   : > { %v1021_v26 = vmul.f32 %v1386_v25, %v1019_v24  ;;  %vm1027_vm14 = vweird.f32 %v1386_v25 }
 0x7f2   : > { %vm1028_vm0 = vmor %vm1026_vm15, %vm1027_vm14 }
 0x7f3   : > { %v1022_v27 = vmul.f32 %v1386_v25, %v1021_v26 }
 0x7f5   : > { %v1023_v28 = vmul.f32 0.5, %v1022_v27 }
 0x7f7   : > { %v1024_v29 = vsub.f32 1.5, %v1023_v28 }
 0x7f9   : > { %v1025_v30 = vmul.f32 %v1386_v25, %v1024_v29 }
 0x7fb   : > { %v1029_v31 = vsel %vm1028_vm0, %v1386_v25, %v1025_v30 }
 0x7fc   : > { %v1030_v32 = vmul.f32 %v1029_v31, %v1013_v19 }
 0x7fe   : > { %v1031_v33 = vmul.f32 %v1361_v0, %v1030_v32 }
 0x800   : > { %v1032_v34 = vadd.f32 %v1362_v3, %v1031_v33 }
 0x802   : > { %v1033_v35 = vmul.f32 0.70710677, %v1032_v34 }
 0x804   : > { %1034 = vst.msk [vmem:[%s1850_s11] sm:$0xff] %vm536_vm1, %v1033_v35 }
 0x805   : > { %1534 = shalt.err (!%p1531_p13)
}
 0x806   : > { %1248 = dma.vmem_to_hbm [thread:$0]  (%p1785_p0), %s1049_s12, 128, %s1051_s9, %s1036_s18  }
 0x807 PF: > { %s2071_s25 = sld [smem:[#allocation16_spill]]  ;;  %p1273_p2 = scmp.ge.s32.totalorder %s1617_s28, 2 }
 0x809   : > { %p1265_p4 = pnand %p1273_p2, %p1792_p6 }
 0x80b   : > { %p1266_p5 = pneg %p1265_p4 }
 0x80d   : > { %s1062_s20 = sand.u32 1, %s2071_s25  }
 0x80e   : > { %s1063_s29 = scalar_lea.sflag [#allocation4], %s1062_s20 }
 0x80f   : > { %1584 = dma.done.wait (%p1266_p5), %s1063_s29, 128  }
 0x810   : > { %1586 = vsyncadd (%p1266_p5), %s1063_s29, 4294967168  ;;  %s32_s28 = sadd.s32 1, %s1617_s28   ;;  %s2073_s19 = sld [smem:[#allocation17_spill]] }
 0x811   : > { %p29_p7 = scmp.ge.s32.totalorder %s32_s28, 6   ;;  %s2074_s23 = sld [smem:[#allocation24_spill]] }
 0x812   : > { %s2075_s24 = sld [smem:[#allocation19_spill]]  ;;  %s2078_s21 = smov %s1593_s22 }
 0x813   : > { %s2076_s26 = sld [smem:[#allocation20_spill]]  ;;  %s2080_s25 = smov %s1613_s27 }
 0x814   : > { %s2077_s13 = sld [smem:[#allocation21_spill]] }
 0x816   : > { %s2079_s22 = smov %s2073_s19  ;;  %31 = sbr.rel (!%p29_p7) target bundleno = 18 (0x12), region = 148 }
 0x81a   : > { %s2081_s27 = smov %s2077_s13 }
 0x81b   :  { %1069 = vsyncpa [#allocation3], 1 }
 0x81c   :  { %1071 = vsyncpa [#allocation3 + $0x1], 1 }
 0x81d   :  { %1072 = vsyncpa [#allocation6], 1 }
 0x81e   :  { %1074 = vsyncpa [#allocation6 + $0x1], 1 }
 0x81f   :  { %1075 = vsyncpa [#allocation9], 1 }
 0x820   :  { %1076 = vsyncpa [#allocation4], 1 }
 0x821   :  { %1078 = vsyncpa [#allocation4 + $0x1], 1 }

</bundles_post_ra>
